<compile_context>
chip_gen: v7x
topology: tpu7x:2x2x1
jax: 0.10.0
libtpu: 0.0.40
codegen_flags: <defaults>
</compile_context>

<pallas_src>
import jax
import jax.numpy as jnp
import numpy as np
from jax.experimental import pallas as pl
from jax.experimental.pallas import tpu as pltpu


# ---------------------------------------------------------------------------
# Stage 1 (fused): conv1(1x1)+BN+ReLU and 1x1 shortcut+BN in ONE MXU pass,
# depthwise 3x3+BN+ReLU, conv3(1x1)+BN, per-tile SE pool partial sums.
# Grid = (N, nH); one (TH*W, Cin) flattened row tile per step; both axes parallel.
# ---------------------------------------------------------------------------
def _stage1_kernel(x_ref, xh_ref, wcat_ref, bcat_ref, w2_ref, b2_ref,
                   w3_ref, b3_ref, s3_ref, short_ref, pool_ref, ext_ref):
    i = pl.program_id(1)
    last = pl.num_programs(1) - 1
    P = x_ref.shape[1]                      # TH * W  (flattened pixels of this tile)
    Cin = x_ref.shape[2]
    W = xh_ref.shape[2] // 2
    Cmid = w3_ref.shape[0]
    Cout = w3_ref.shape[1]

    # --- conv1 + shortcut fused: one bf16 MXU pass over the main tile -------------
    x2d = x_ref[0]                                              # (P, Cin) f32
    y = jnp.dot(x2d.astype(jnp.bfloat16), wcat_ref[...],
                preferred_element_type=jnp.float32) + bcat_ref[...]
    s1 = jnp.maximum(y[:, :Cmid], 0.0)                          # conv1 + BN + ReLU
    short_ref[0] = y[:, Cmid:].astype(jnp.bfloat16)             # 1x1 shortcut + BN (no act)

    # --- halo rows (conv1 path only), zeroed at the image top/bottom borders ------
    xh2d = xh_ref[0, 0]                                         # (2W, Cin): [row above, row below]
    yh = jnp.dot(xh2d.astype(jnp.bfloat16), wcat_ref[...],
                 preferred_element_type=jnp.float32) + bcat_ref[...]
    s1h = jnp.maximum(yh[:, :Cmid], 0.0)
    top = jnp.where(i == 0, 0.0, s1h[:W])                       # zero pad at image top
    bot = jnp.where(i == last, 0.0, s1h[W:])                    # zero pad at image bottom

    # --- assemble the row-halo strip: [guard, top, main, bot, guard] --------------
    zrow = jnp.zeros((1, Cmid), jnp.float32)
    ext_ref[pl.ds(0, 1), :] = zrow
    ext_ref[pl.ds(1, W), :] = top
    ext_ref[pl.ds(1 + W, P), :] = s1
    ext_ref[pl.ds(1 + W + P, W), :] = bot
    ext_ref[pl.ds(1 + W + P + W, 1), :] = zrow

    # --- depthwise 3x3 + BN + ReLU on flattened rows; W borders via iota masks ----
    col = jax.lax.broadcasted_iota(jnp.int32, (P, Cmid), 0) % W
    not_first = col != 0
    not_last = col != (W - 1)
    w2 = w2_ref[...]                                            # (9, Cmid) folded taps
    acc = jnp.broadcast_to(b2_ref[...], (P, Cmid))
    for dh in range(3):
        base = dh * W
        acc = acc + ext_ref[pl.ds(base + 1, P), :] * w2[3 * dh + 1]
        acc = acc + jnp.where(not_first, ext_ref[pl.ds(base, P), :], 0.0) * w2[3 * dh + 0]
        acc = acc + jnp.where(not_last, ext_ref[pl.ds(base + 2, P), :], 0.0) * w2[3 * dh + 2]
    s2 = jnp.maximum(acc, 0.0)

    # --- conv3 (1x1 + BN, no activation) + SE global-pool partial sum -------------
    s3 = jnp.dot(s2.astype(jnp.bfloat16), w3_ref[...],
                 preferred_element_type=jnp.float32) + b3_ref[...]
    s3_ref[0] = s3.astype(jnp.bfloat16)
    pool_ref[...] = jnp.sum(s3, axis=0, keepdims=True).reshape(1, 1, 1, Cout)


# ---------------------------------------------------------------------------
# Stage 2: channel gate + shortcut + final ReLU.  Fully lane-dense (W*Cout
# minor dim), pure elementwise; gate is precomputed per image in the wrapper.
# ---------------------------------------------------------------------------
def _stage2_kernel(s3_ref, short_ref, gate_ref, o_ref):
    s3 = s3_ref[...].astype(jnp.float32)
    short = short_ref[...].astype(jnp.float32)
    o_ref[...] = jnp.maximum(short + s3 * gate_ref[...], 0.0)


# ---------------------------------------------------------------------------
# Parameter setup / BN folding (glue, plain JAX)
# ---------------------------------------------------------------------------
def fold_bn(w, gamma, beta, mean, var, eps=1e-5):
    scale = gamma / jnp.sqrt(var + eps)
    return w * scale[None, :], beta - mean * scale


def init_params(key, cin, cout, groups=16, reduction=8):
    mid = groups * (cout // 2 // groups)
    assert mid == groups, "this kernel implements the 1-channel-per-group (depthwise) case"
    cr = cout // reduction
    keys = jax.random.split(key, 12)

    def w(k, shape):
        return jax.random.normal(k, shape, jnp.float32) * 0.1

    def bn(k, c):
        k1, k2, k3, k4 = jax.random.split(k, 4)
        return (jax.random.uniform(k1, (c,), jnp.float32, 0.5, 1.5),   # gamma
                jax.random.normal(k2, (c,), jnp.float32) * 0.1,        # beta
                jax.random.normal(k3, (c,), jnp.float32) * 0.1,        # running_mean
                jax.random.uniform(k4, (c,), jnp.float32, 0.5, 1.5))   # running_var

    return dict(
        w1=w(keys[0], (cin, mid)),    bn1=bn(keys[1], mid),
        w2=w(keys[2], (9, mid)),      bn2=bn(keys[3], mid),      # 3x3 depthwise taps
        w3=w(keys[4], (mid, cout)),   bn3=bn(keys[5], cout),
        wsc=w(keys[6], (cin, cout)),  bnsc=bn(keys[7], cout),
        wse1=w(keys[8], (cout, cr)),  bse1=w(keys[9], (cr,)),
        wse2=w(keys[10], (cr, cout)), bse2=w(keys[11], (cout,)),
    )


# ---------------------------------------------------------------------------
# Channel-aware tile pickers (budget the double-buffered working set vs VMEM).
# ---------------------------------------------------------------------------
def _pick_tile_rows_stage1(H, W, Cin, Cmid, Cout, requested=None,
                           budget_bytes=8 * 1024 * 1024):
    cands = [d for d in range(1, H + 1)
             if H % d == 0 and (d == H or (d % 8 == 0 and (d * W) % 16 == 0))]
    if requested is not None:
        assert requested in cands, (
            f"tile_rows must divide H and keep blocks tile-aligned; got {requested}, H={H}")
        return requested

    def tile_bytes(th):
        p = th * W
        x_blk = p * Cin * 4
        halo = 2 * W * Cin * 4
        outs = 2 * p * Cout * 2                      # bf16 s3 + short blocks
        scratch = (p + 2 * W + 2) * Cmid * 4
        live = 4 * p * max(Cmid + Cout, Cin) * 4     # rough in-register working values
        return 2 * (x_blk + halo + outs) + scratch + live

    fits = [d for d in cands if tile_bytes(d) <= budget_bytes]
    return max(fits) if fits else min(cands, key=tile_bytes)


def _pick_tile_rows_stage2(H, W, Cout, budget_bytes=12 * 1024 * 1024):
    cands = [d for d in range(1, H + 1) if H % d == 0 and (d == H or d % 16 == 0)]

    def tile_bytes(th):
        return 2 * (2 * th * W * Cout * 2) + 2 * th * W * Cout * 4 + th * W * Cout * 4

    fits = [d for d in cands if tile_bytes(d) <= budget_bytes]
    return max(fits) if fits else min(cands, key=tile_bytes)


# ---------------------------------------------------------------------------
# Forward pass.  Core path is NHWC (a full BiFPN can stay NHWC end-to-end);
# merge2d_forward mirrors the PyTorch NCHW interface.
# ---------------------------------------------------------------------------
def merge2d_forward_nhwc(params, x_nhwc, tile_rows=None):
    N, H, W, Cin = x_nhwc.shape

    w1, b1 = fold_bn(params["w1"], *params["bn1"])
    w2, b2 = fold_bn(params["w2"], *params["bn2"])
    w3, b3 = fold_bn(params["w3"], *params["bn3"])
    wsc, bsc = fold_bn(params["wsc"], *params["bnsc"])
    Cmid = w1.shape[1]
    Cout = w3.shape[1]

    TH = _pick_tile_rows_stage1(H, W, Cin, Cmid, Cout, tile_rows)
    nH = H // TH
    P = TH * W
    vmem_limit = 32 * 1024 * 1024

    # Fused conv1 + shortcut weights (single MXU pass; bf16 operands, f32 accumulate).
    wcat = jnp.concatenate([w1, wsc], axis=1).astype(jnp.bfloat16)    # (Cin, Cmid+Cout)
    bcat = jnp.concatenate([b1, bsc]).reshape(1, Cmid + Cout)
    w3b = w3.astype(jnp.bfloat16)

    # Row halos for the 3x3 window: image row above / below each tile (wrapped entries are
    # masked in-kernel at the image borders).  Only ~2/TH of x in extra HBM traffic.
    x_top = jnp.roll(x_nhwc[:, TH - 1::TH], 1, axis=1)                # (N, nH, W, Cin)
    x_bot = jnp.roll(x_nhwc[:, 0::TH], -1, axis=1)                    # (N, nH, W, Cin)
    x_halo = jnp.stack([x_top, x_bot], axis=2).reshape(N, nH, 2 * W, Cin)

    x_flat = x_nhwc.reshape(N, H * W, Cin)

    s3_arr, short_arr, pool_part = pl.pallas_call(
        _stage1_kernel,
        grid=(N, nH),
        in_specs=[
            pl.BlockSpec((1, P, Cin), lambda n, i: (n, i, 0)),          # x tile (flattened rows)
            pl.BlockSpec((1, 1, 2 * W, Cin), lambda n, i: (n, i, 0, 0)),  # halo rows (above, below)
            pl.BlockSpec((Cin, Cmid + Cout), lambda n, i: (0, 0)),      # [w1 | wsc]  bf16
            pl.BlockSpec((1, Cmid + Cout), lambda n, i: (0, 0)),        # [b1 | bsc]
            pl.BlockSpec((9, Cmid), lambda n, i: (0, 0)),               # 3x3 depthwise taps
            pl.BlockSpec((1, Cmid), lambda n, i: (0, 0)),               # b2
            pl.BlockSpec((Cmid, Cout), lambda n, i: (0, 0)),            # w3  bf16
            pl.BlockSpec((1, Cout), lambda n, i: (0, 0)),               # b3
        ],
        out_specs=(
            pl.BlockSpec((1, P, Cout), lambda n, i: (n, i, 0)),         # s3   (bf16)
            pl.BlockSpec((1, P, Cout), lambda n, i: (n, i, 0)),         # shortcut (bf16)
            pl.BlockSpec((1, 1, 1, Cout), lambda n, i: (n, i, 0, 0)),   # pool partial sum
        ),
        out_shape=(
            jax.ShapeDtypeStruct((N, H * W, Cout), jnp.bfloat16),
            jax.ShapeDtypeStruct((N, H * W, Cout), jnp.bfloat16),
            jax.ShapeDtypeStruct((N, nH, 1, Cout), jnp.float32),
        ),
        scratch_shapes=[pltpu.VMEM((P + 2 * W + 2, Cmid), jnp.float32)],
        compiler_params=pltpu.CompilerParams(
            dimension_semantics=("parallel", "parallel"),
            vmem_limit_bytes=vmem_limit,
        ),
    )(x_flat, x_halo, wcat, bcat, w2, b2.reshape(1, Cmid), w3b, b3.reshape(1, Cout))

    # SE gate: once per image, plain JAX on the tiny pooled vector.
    pooled = jnp.sum(pool_part, axis=(1, 2)) / float(H * W)            # (N, Cout)
    hse = jnp.maximum(pooled @ params["wse1"] + params["bse1"], 0.0)
    gate = jax.nn.sigmoid(hse @ params["wse2"] + params["bse2"])       # (N, Cout)
    gate_t = jnp.tile(gate[:, None, :], (1, 1, W))                     # (N, 1, W*Cout), lane-dense

    # Lane-dense views of the intermediates (free row-major reinterpretation).
    s3v = s3_arr.reshape(N, H, W * Cout)
    shortv = short_arr.reshape(N, H, W * Cout)

    TH2 = _pick_tile_rows_stage2(H, W, Cout)
    out = pl.pallas_call(
        _stage2_kernel,
        grid=(N, H // TH2),
        in_specs=[
            pl.BlockSpec((1, TH2, W * Cout), lambda n, i: (n, i, 0)),   # s3
            pl.BlockSpec((1, TH2, W * Cout), lambda n, i: (n, i, 0)),   # shortcut
            pl.BlockSpec((1, 1, W * Cout), lambda n, i: (n, 0, 0)),     # gate (pre-tiled)
        ],
        out_specs=pl.BlockSpec((1, TH2, W * Cout), lambda n, i: (n, i, 0)),
        out_shape=jax.ShapeDtypeStruct((N, H, W * Cout), jnp.float32),
        compiler_params=pltpu.CompilerParams(
            dimension_semantics=("parallel", "parallel"),
            vmem_limit_bytes=vmem_limit,
        ),
    )(s3v, shortv, gate_t)

    return out.reshape(N, H, W, Cout)


def merge2d_forward(params, *inputs, tile_rows=None):
    # PyTorch-style NCHW interface: cat on channels, run, transpose back.
    x = jnp.concatenate(inputs, axis=1)
    x_nhwc = jnp.transpose(x, (0, 2, 3, 1))
    out_nhwc = merge2d_forward_nhwc(params, x_nhwc, tile_rows=tile_rows)
    return jnp.transpose(out_nhwc, (0, 3, 1, 2))


# Pure-JAX f32 reference (same math, no Pallas) for the correctness check.
def merge2d_reference(params, *inputs):
    x = jnp.concatenate(inputs, axis=1)
    N, Cin, H, W = x.shape
    xh = jnp.transpose(x, (0, 2, 3, 1))
    w1, b1 = fold_bn(params["w1"], *params["bn1"])
    w2, b2 = fold_bn(params["w2"], *params["bn2"])
    w3, b3 = fold_bn(params["w3"], *params["bn3"])
    wsc, bsc = fold_bn(params["wsc"], *params["bnsc"])
    s = jnp.maximum(jnp.einsum("nhwc,cd->nhwd", xh, w1) + b1, 0.0)
    sp = jnp.pad(s, ((0, 0), (1, 1), (1, 1), (0, 0)))
    acc = jnp.zeros_like(s)
    for dh in range(3):
        for dw in range(3):
            acc = acc + sp[:, dh:dh + H, dw:dw + W, :] * w2[dh * 3 + dw]
    s = jnp.maximum(acc + b2, 0.0)
    s = jnp.einsum("nhwc,cd->nhwd", s, w3) + b3
    pooled = jnp.mean(s, axis=(1, 2))
    h = jnp.maximum(pooled @ params["wse1"] + params["bse1"], 0.0)
    gate = jax.nn.sigmoid(h @ params["wse2"] + params["bse2"])
    s = s * gate[:, None, None, :]
    short = jnp.einsum("nhwc,cd->nhwd", xh, wsc) + bsc
    out = jnp.maximum(short + s, 0.0)
    return jnp.transpose(out, (0, 3, 1, 2))


if __name__ == "__main__":
    key = jax.random.PRNGKey(0)
    k1, k2, kp = jax.random.split(key, 3)
    N, C_each, H, W = 2, 32, 16, 16        # two BiFPN inputs of 32 channels each
    out_channels = 32                      # Merge2d(in_channels=64, out_channels=32)
    x1 = jax.random.normal(k1, (N, C_each, H, W), jnp.float32)
    x2 = jax.random.normal(k2, (N, C_each, H, W), jnp.float32)

    params = init_params(kp, cin=2 * C_each, cout=out_channels)

    # tile_rows=8 -> 2 row tiles per image: exercises the halo rows and the pool partials.
    out = merge2d_forward(params, x1, x2, tile_rows=8)
    out = jax.block_until_ready(out)

    ref = merge2d_reference(params, x1, x2)
    # bf16 MXU operands + bf16 HBM intermediates -> looser tolerance than the all-f32 path.
    np.testing.assert_allclose(np.asarray(out), np.asarray(ref), rtol=3e-2, atol=3e-2)
    assert out.shape == (N, out_channels, H, W)
    print("KERNEL_OK")
</pallas_src>

<mosaic_0001>
module attributes {stable_mosaic.version = 11 : i64} {
  func.func @_stage1_kernel(%arg0: i32, %arg1: i32, %arg2: memref<1x128x64xf32, #tpu.memory_space<vmem>>, %arg3: memref<1x1x32x64xf32, #tpu.memory_space<vmem>>, %arg4: memref<64x48xbf16, #tpu.memory_space<vmem>>, %arg5: memref<1x48xf32, #tpu.memory_space<vmem>>, %arg6: memref<9x16xf32, #tpu.memory_space<vmem>>, %arg7: memref<1x16xf32, #tpu.memory_space<vmem>>, %arg8: memref<16x32xbf16, #tpu.memory_space<vmem>>, %arg9: memref<1x32xf32, #tpu.memory_space<vmem>>, %arg10: memref<1x128x32xbf16, #tpu.memory_space<vmem>>, %arg11: memref<1x128x32xbf16, #tpu.memory_space<vmem>>, %arg12: memref<1x1x1x32xf32, #tpu.memory_space<vmem>>, %arg13: memref<162x16xf32, #tpu.memory_space<vmem>>) attributes {dimension_semantics = [#tpu.dimension_semantics<parallel>, #tpu.dimension_semantics<parallel>], iteration_bounds = array<i64: 2, 2>, scalar_prefetch = 0 : i64, scratch_operands = 1 : i64, tpu.core_type = #tpu.core_type<tc>, window_params = [{transform_indices = @transform_0, window_bounds = array<i64: 1, 128, 64>}, {transform_indices = @transform_1, window_bounds = array<i64: 1, 1, 32, 64>}, {pipeline_mode = #tpu.pipeline_mode<synchronous>, transform_indices = @transform_2, window_bounds = array<i64: 64, 48>}, {pipeline_mode = #tpu.pipeline_mode<synchronous>, transform_indices = @transform_3, window_bounds = array<i64: 1, 48>}, {pipeline_mode = #tpu.pipeline_mode<synchronous>, transform_indices = @transform_4, window_bounds = array<i64: 9, 16>}, {pipeline_mode = #tpu.pipeline_mode<synchronous>, transform_indices = @transform_5, window_bounds = array<i64: 1, 16>}, {pipeline_mode = #tpu.pipeline_mode<synchronous>, transform_indices = @transform_6, window_bounds = array<i64: 16, 32>}, {pipeline_mode = #tpu.pipeline_mode<synchronous>, transform_indices = @transform_7, window_bounds = array<i64: 1, 32>}, {transform_indices = @transform_8, window_bounds = array<i64: 1, 128, 32>}, {transform_indices = @transform_9, window_bounds = array<i64: 1, 128, 32>}, {transform_indices = @transform_10, window_bounds = array<i64: 1, 1, 1, 32>}]} {
    %c0 = arith.constant 0 : index
    %c0_0 = arith.constant 0 : index
    %c0_1 = arith.constant 0 : index
    %0 = vector.load %arg2[%c0, %c0_0, %c0_1] : memref<1x128x64xf32, #tpu.memory_space<vmem>>, vector<1x128x64xf32>
    %1 = vector.shape_cast %0 : vector<1x128x64xf32> to vector<128x64xf32>
    %2 = arith.truncf %1 : vector<128x64xf32> to vector<128x64xbf16>
    %c0_2 = arith.constant 0 : index
    %c0_3 = arith.constant 0 : index
    %3 = vector.load %arg4[%c0_2, %c0_3] : memref<64x48xbf16, #tpu.memory_space<vmem>>, vector<64x48xbf16>
    %cst = arith.constant dense<0.000000e+00> : vector<128x48xf32>
    %4 = tpu.matmul %2, %3, %cst {dimension_numbers = #tpu.dot_dimension_numbers<[1], [0], [0], [1], [0, 0, 1, 1], [], []>} : vector<128x64xbf16>, vector<64x48xbf16>, vector<128x48xf32> -> vector<128x48xf32>
    %c0_4 = arith.constant 0 : index
    %c0_5 = arith.constant 0 : index
    %5 = vector.load %arg5[%c0_4, %c0_5] : memref<1x48xf32, #tpu.memory_space<vmem>>, vector<1x48xf32>
    %6 = vector.broadcast %5 : vector<1x48xf32> to vector<128x48xf32>
    %7 = arith.addf %4, %6 : vector<128x48xf32>
    %8 = vector.extract_strided_slice %7 {offsets = [0, 0], sizes = [128, 16], strides = [1, 1]} : vector<128x48xf32> to vector<128x16xf32>
    %cst_6 = arith.constant 0.000000e+00 : f32
    %9 = vector.broadcast %cst_6 : f32 to vector<128x16xf32>
    %10 = arith.maximumf %8, %9 : vector<128x16xf32>
    %11 = vector.extract_strided_slice %7 {offsets = [0, 16], sizes = [128, 32], strides = [1, 1]} : vector<128x48xf32> to vector<128x32xf32>
    %12 = arith.truncf %11 : vector<128x32xf32> to vector<128x32xbf16>
    %c0_7 = arith.constant 0 : index
    %c0_8 = arith.constant 0 : index
    %c0_9 = arith.constant 0 : index
    %13 = vector.load %arg11[%c0_7, %c0_8, %c0_9] : memref<1x128x32xbf16, #tpu.memory_space<vmem>>, vector<1x128x32xbf16>
    %14 = vector.shape_cast %13 : vector<1x128x32xbf16> to vector<128x32xbf16>
    %15 = vector.shape_cast %12 : vector<128x32xbf16> to vector<1x128x32xbf16>
    tpu.vector_store %arg11[%c0_7, %c0_8, %c0_9], %15 {strides = array<i32>} : memref<1x128x32xbf16, #tpu.memory_space<vmem>>, vector<1x128x32xbf16>,
    %c0_10 = arith.constant 0 : index
    %c0_11 = arith.constant 0 : index
    %c0_12 = arith.constant 0 : index
    %c0_13 = arith.constant 0 : index
    %16 = vector.load %arg3[%c0_10, %c0_11, %c0_12, %c0_13] : memref<1x1x32x64xf32, #tpu.memory_space<vmem>>, vector<1x1x32x64xf32>
    %17 = vector.shape_cast %16 : vector<1x1x32x64xf32> to vector<32x64xf32>
    %18 = arith.truncf %17 : vector<32x64xf32> to vector<32x64xbf16>
    %c0_14 = arith.constant 0 : index
    %c0_15 = arith.constant 0 : index
    %19 = vector.load %arg4[%c0_14, %c0_15] : memref<64x48xbf16, #tpu.memory_space<vmem>>, vector<64x48xbf16>
    %cst_16 = arith.constant dense<0.000000e+00> : vector<32x48xf32>
    %20 = tpu.matmul %18, %19, %cst_16 {dimension_numbers = #tpu.dot_dimension_numbers<[1], [0], [0], [1], [0, 0, 1, 1], [], []>} : vector<32x64xbf16>, vector<64x48xbf16>, vector<32x48xf32> -> vector<32x48xf32>
    %c0_17 = arith.constant 0 : index
    %c0_18 = arith.constant 0 : index
    %21 = vector.load %arg5[%c0_17, %c0_18] : memref<1x48xf32, #tpu.memory_space<vmem>>, vector<1x48xf32>
    %22 = vector.broadcast %21 : vector<1x48xf32> to vector<32x48xf32>
    %23 = arith.addf %20, %22 : vector<32x48xf32>
    %24 = vector.extract_strided_slice %23 {offsets = [0, 0], sizes = [32, 16], strides = [1, 1]} : vector<32x48xf32> to vector<32x16xf32>
    %cst_19 = arith.constant 0.000000e+00 : f32
    %25 = vector.broadcast %cst_19 : f32 to vector<32x16xf32>
    %26 = arith.maximumf %24, %25 : vector<32x16xf32>
    %c0_i32 = arith.constant 0 : i32
    %27 = arith.cmpi eq, %arg1, %c0_i32 : i32
    %28 = vector.extract_strided_slice %26 {offsets = [0, 0], sizes = [16, 16], strides = [1, 1]} : vector<32x16xf32> to vector<16x16xf32>
    %cst_20 = arith.constant 0.000000e+00 : f32
    %29 = vector.broadcast %cst_20 : f32 to vector<16x16xf32>
    %30 = arith.select %27, %29, %28 : vector<16x16xf32>
    %c1_i32 = arith.constant 1 : i32
    %31 = arith.cmpi eq, %arg1, %c1_i32 : i32
    %32 = vector.extract_strided_slice %26 {offsets = [16, 0], sizes = [16, 16], strides = [1, 1]} : vector<32x16xf32> to vector<16x16xf32>
    %cst_21 = arith.constant 0.000000e+00 : f32
    %33 = vector.broadcast %cst_21 : f32 to vector<16x16xf32>
    %34 = arith.select %31, %33, %32 : vector<16x16xf32>
    %cst_22 = arith.constant 0.000000e+00 : f32
    %35 = vector.broadcast %cst_22 : f32 to vector<1x16xf32>
    %c0_23 = arith.constant 0 : index
    %c0_24 = arith.constant 0 : index
    %36 = vector.load %arg13[%c0_23, %c0_24] : memref<162x16xf32, #tpu.memory_space<vmem>>, vector<1x16xf32>
    tpu.vector_store %arg13[%c0_23, %c0_24], %35 {strides = array<i32>} : memref<162x16xf32, #tpu.memory_space<vmem>>, vector<1x16xf32>,
    %c1 = arith.constant 1 : index
    %c0_25 = arith.constant 0 : index
    %37 = vector.load %arg13[%c1, %c0_25] : memref<162x16xf32, #tpu.memory_space<vmem>>, vector<16x16xf32>
    tpu.vector_store %arg13[%c1, %c0_25], %30 {strides = array<i32>} : memref<162x16xf32, #tpu.memory_space<vmem>>, vector<16x16xf32>,
    %c17 = arith.constant 17 : index
    %c0_26 = arith.constant 0 : index
    %38 = vector.load %arg13[%c17, %c0_26] : memref<162x16xf32, #tpu.memory_space<vmem>>, vector<128x16xf32>
    tpu.vector_store %arg13[%c17, %c0_26], %10 {strides = array<i32>} : memref<162x16xf32, #tpu.memory_space<vmem>>, vector<128x16xf32>,
    %c145 = arith.constant 145 : index
    %c0_27 = arith.constant 0 : index
    %39 = vector.load %arg13[%c145, %c0_27] : memref<162x16xf32, #tpu.memory_space<vmem>>, vector<16x16xf32>
    tpu.vector_store %arg13[%c145, %c0_27], %34 {strides = array<i32>} : memref<162x16xf32, #tpu.memory_space<vmem>>, vector<16x16xf32>,
    %c161 = arith.constant 161 : index
    %c0_28 = arith.constant 0 : index
    %40 = vector.load %arg13[%c161, %c0_28] : memref<162x16xf32, #tpu.memory_space<vmem>>, vector<1x16xf32>
    tpu.vector_store %arg13[%c161, %c0_28], %35 {strides = array<i32>} : memref<162x16xf32, #tpu.memory_space<vmem>>, vector<1x16xf32>,
    %41 = tpu.iota {dimensions = array<i32: 0>} : vector<128x16xi32>
    %c16_i32 = arith.constant 16 : i32
    %c0_i32_29 = arith.constant 0 : i32
    %42 = arith.cmpi eq, %c16_i32, %c0_i32_29 : i32
    %c1_i32_30 = arith.constant 1 : i32
    %43 = arith.select %42, %c1_i32_30, %c16_i32 : i32
    %44 = vector.broadcast %43 : i32 to vector<128x16xi32>
    %45 = arith.remsi %41, %44 : vector<128x16xi32>
    %c0_i32_31 = arith.constant 0 : i32
    %46 = vector.broadcast %c0_i32_31 : i32 to vector<128x16xi32>
    %47 = arith.cmpi ne, %45, %46 : vector<128x16xi32>
    %c0_i32_32 = arith.constant 0 : i32
    %48 = vector.broadcast %c0_i32_32 : i32 to vector<128x16xi32>
    %49 = arith.cmpi slt, %45, %48 : vector<128x16xi32>
    %c0_i32_33 = arith.constant 0 : i32
    %50 = arith.cmpi slt, %43, %c0_i32_33 : i32
    %51 = vector.broadcast %50 : i1 to vector<128x16xi1>
    %52 = vector.broadcast %51 : vector<128x16xi1> to vector<128x16xi1>
    %53 = arith.xori %49, %52 : vector<128x16xi1>
    %54 = arith.andi %53, %47 : vector<128x16xi1>
    %55 = vector.broadcast %43 : i32 to vector<128x16xi32>
    %56 = arith.addi %45, %55 : vector<128x16xi32>
    %57 = arith.select %54, %56, %45 : vector<128x16xi1>, vector<128x16xi32>
    %c0_i32_34 = arith.constant 0 : i32
    %58 = vector.broadcast %c0_i32_34 : i32 to vector<128x16xi32>
    %59 = arith.cmpi ne, %57, %58 : vector<128x16xi32>
    %c15_i32 = arith.constant 15 : i32
    %60 = vector.broadcast %c15_i32 : i32 to vector<128x16xi32>
    %61 = arith.cmpi ne, %57, %60 : vector<128x16xi32>
    %c0_35 = arith.constant 0 : index
    %c0_36 = arith.constant 0 : index
    %62 = vector.load %arg6[%c0_35, %c0_36] : memref<9x16xf32, #tpu.memory_space<vmem>>, vector<9x16xf32>
    %c0_37 = arith.constant 0 : index
    %c0_38 = arith.constant 0 : index
    %63 = vector.load %arg7[%c0_37, %c0_38] : memref<1x16xf32, #tpu.memory_space<vmem>>, vector<1x16xf32>
    %64 = vector.shape_cast %63 : vector<1x16xf32> to vector<1x16xf32>
    %65 = vector.broadcast %64 : vector<1x16xf32> to vector<128x16xf32>
    %c1_39 = arith.constant 1 : index
    %c0_40 = arith.constant 0 : index
    %66 = vector.load %arg13[%c1_39, %c0_40] : memref<162x16xf32, #tpu.memory_space<vmem>>, vector<128x16xf32>
    %67 = vector.extract_strided_slice %62 {offsets = [1, 0], sizes = [1, 16], strides = [1, 1]} : vector<9x16xf32> to vector<1x16xf32>
    %68 = vector.shape_cast %67 : vector<1x16xf32> to vector<16xf32>
    %69 = vector.shape_cast %68 : vector<16xf32> to vector<1x16xf32>
    %70 = vector.broadcast %69 : vector<1x16xf32> to vector<128x16xf32>
    %71 = arith.mulf %66, %70 : vector<128x16xf32>
    %72 = arith.addf %65, %71 : vector<128x16xf32>
    %c0_41 = arith.constant 0 : index
    %c0_42 = arith.constant 0 : index
    %73 = vector.load %arg13[%c0_41, %c0_42] : memref<162x16xf32, #tpu.memory_space<vmem>>, vector<128x16xf32>
    %cst_43 = arith.constant 0.000000e+00 : f32
    %74 = vector.broadcast %cst_43 : f32 to vector<128x16xf32>
    %75 = arith.select %59, %73, %74 : vector<128x16xi1>, vector<128x16xf32>
    %76 = vector.extract_strided_slice %62 {offsets = [0, 0], sizes = [1, 16], strides = [1, 1]} : vector<9x16xf32> to vector<1x16xf32>
    %77 = vector.shape_cast %76 : vector<1x16xf32> to vector<16xf32>
    %78 = vector.shape_cast %77 : vector<16xf32> to vector<1x16xf32>
    %79 = vector.broadcast %78 : vector<1x16xf32> to vector<128x16xf32>
    %80 = arith.mulf %75, %79 : vector<128x16xf32>
    %81 = arith.addf %72, %80 : vector<128x16xf32>
    %c2 = arith.constant 2 : index
    %c0_44 = arith.constant 0 : index
    %82 = vector.load %arg13[%c2, %c0_44] : memref<162x16xf32, #tpu.memory_space<vmem>>, vector<128x16xf32>
    %cst_45 = arith.constant 0.000000e+00 : f32
    %83 = vector.broadcast %cst_45 : f32 to vector<128x16xf32>
    %84 = arith.select %61, %82, %83 : vector<128x16xi1>, vector<128x16xf32>
    %85 = vector.extract_strided_slice %62 {offsets = [2, 0], sizes = [1, 16], strides = [1, 1]} : vector<9x16xf32> to vector<1x16xf32>
    %86 = vector.shape_cast %85 : vector<1x16xf32> to vector<16xf32>
    %87 = vector.shape_cast %86 : vector<16xf32> to vector<1x16xf32>
    %88 = vector.broadcast %87 : vector<1x16xf32> to vector<128x16xf32>
    %89 = arith.mulf %84, %88 : vector<128x16xf32>
    %90 = arith.addf %81, %89 : vector<128x16xf32>
    %c17_46 = arith.constant 17 : index
    %c0_47 = arith.constant 0 : index
    %91 = vector.load %arg13[%c17_46, %c0_47] : memref<162x16xf32, #tpu.memory_space<vmem>>, vector<128x16xf32>
    %92 = vector.extract_strided_slice %62 {offsets = [4, 0], sizes = [1, 16], strides = [1, 1]} : vector<9x16xf32> to vector<1x16xf32>
    %93 = vector.shape_cast %92 : vector<1x16xf32> to vector<16xf32>
    %94 = vector.shape_cast %93 : vector<16xf32> to vector<1x16xf32>
    %95 = vector.broadcast %94 : vector<1x16xf32> to vector<128x16xf32>
    %96 = arith.mulf %91, %95 : vector<128x16xf32>
    %97 = arith.addf %90, %96 : vector<128x16xf32>
    %c16 = arith.constant 16 : index
    %c0_48 = arith.constant 0 : index
    %98 = vector.load %arg13[%c16, %c0_48] : memref<162x16xf32, #tpu.memory_space<vmem>>, vector<128x16xf32>
    %cst_49 = arith.constant 0.000000e+00 : f32
    %99 = vector.broadcast %cst_49 : f32 to vector<128x16xf32>
    %100 = arith.select %59, %98, %99 : vector<128x16xi1>, vector<128x16xf32>
    %101 = vector.extract_strided_slice %62 {offsets = [3, 0], sizes = [1, 16], strides = [1, 1]} : vector<9x16xf32> to vector<1x16xf32>
    %102 = vector.shape_cast %101 : vector<1x16xf32> to vector<16xf32>
    %103 = vector.shape_cast %102 : vector<16xf32> to vector<1x16xf32>
    %104 = vector.broadcast %103 : vector<1x16xf32> to vector<128x16xf32>
    %105 = arith.mulf %100, %104 : vector<128x16xf32>
    %106 = arith.addf %97, %105 : vector<128x16xf32>
    %c18 = arith.constant 18 : index
    %c0_50 = arith.constant 0 : index
    %107 = vector.load %arg13[%c18, %c0_50] : memref<162x16xf32, #tpu.memory_space<vmem>>, vector<128x16xf32>
    %cst_51 = arith.constant 0.000000e+00 : f32
    %108 = vector.broadcast %cst_51 : f32 to vector<128x16xf32>
    %109 = arith.select %61, %107, %108 : vector<128x16xi1>, vector<128x16xf32>
    %110 = vector.extract_strided_slice %62 {offsets = [5, 0], sizes = [1, 16], strides = [1, 1]} : vector<9x16xf32> to vector<1x16xf32>
    %111 = vector.shape_cast %110 : vector<1x16xf32> to vector<16xf32>
    %112 = vector.shape_cast %111 : vector<16xf32> to vector<1x16xf32>
    %113 = vector.broadcast %112 : vector<1x16xf32> to vector<128x16xf32>
    %114 = arith.mulf %109, %113 : vector<128x16xf32>
    %115 = arith.addf %106, %114 : vector<128x16xf32>
    %c33 = arith.constant 33 : index
    %c0_52 = arith.constant 0 : index
    %116 = vector.load %arg13[%c33, %c0_52] : memref<162x16xf32, #tpu.memory_space<vmem>>, vector<128x16xf32>
    %117 = vector.extract_strided_slice %62 {offsets = [7, 0], sizes = [1, 16], strides = [1, 1]} : vector<9x16xf32> to vector<1x16xf32>
    %118 = vector.shape_cast %117 : vector<1x16xf32> to vector<16xf32>
    %119 = vector.shape_cast %118 : vector<16xf32> to vector<1x16xf32>
    %120 = vector.broadcast %119 : vector<1x16xf32> to vector<128x16xf32>
    %121 = arith.mulf %116, %120 : vector<128x16xf32>
    %122 = arith.addf %115, %121 : vector<128x16xf32>
    %c32 = arith.constant 32 : index
    %c0_53 = arith.constant 0 : index
    %123 = vector.load %arg13[%c32, %c0_53] : memref<162x16xf32, #tpu.memory_space<vmem>>, vector<128x16xf32>
    %cst_54 = arith.constant 0.000000e+00 : f32
    %124 = vector.broadcast %cst_54 : f32 to vector<128x16xf32>
    %125 = arith.select %59, %123, %124 : vector<128x16xi1>, vector<128x16xf32>
    %126 = vector.extract_strided_slice %62 {offsets = [6, 0], sizes = [1, 16], strides = [1, 1]} : vector<9x16xf32> to vector<1x16xf32>
    %127 = vector.shape_cast %126 : vector<1x16xf32> to vector<16xf32>
    %128 = vector.shape_cast %127 : vector<16xf32> to vector<1x16xf32>
    %129 = vector.broadcast %128 : vector<1x16xf32> to vector<128x16xf32>
    %130 = arith.mulf %125, %129 : vector<128x16xf32>
    %131 = arith.addf %122, %130 : vector<128x16xf32>
    %c34 = arith.constant 34 : index
    %c0_55 = arith.constant 0 : index
    %132 = vector.load %arg13[%c34, %c0_55] : memref<162x16xf32, #tpu.memory_space<vmem>>, vector<128x16xf32>
    %cst_56 = arith.constant 0.000000e+00 : f32
    %133 = vector.broadcast %cst_56 : f32 to vector<128x16xf32>
    %134 = arith.select %61, %132, %133 : vector<128x16xi1>, vector<128x16xf32>
    %135 = vector.extract_strided_slice %62 {offsets = [8, 0], sizes = [1, 16], strides = [1, 1]} : vector<9x16xf32> to vector<1x16xf32>
    %136 = vector.shape_cast %135 : vector<1x16xf32> to vector<16xf32>
    %137 = vector.shape_cast %136 : vector<16xf32> to vector<1x16xf32>
    %138 = vector.broadcast %137 : vector<1x16xf32> to vector<128x16xf32>
    %139 = arith.mulf %134, %138 : vector<128x16xf32>
    %140 = arith.addf %131, %139 : vector<128x16xf32>
    %cst_57 = arith.constant 0.000000e+00 : f32
    %141 = vector.broadcast %cst_57 : f32 to vector<128x16xf32>
    %142 = arith.maximumf %140, %141 : vector<128x16xf32>
    %143 = arith.truncf %142 : vector<128x16xf32> to vector<128x16xbf16>
    %c0_58 = arith.constant 0 : index
    %c0_59 = arith.constant 0 : index
    %144 = vector.load %arg8[%c0_58, %c0_59] : memref<16x32xbf16, #tpu.memory_space<vmem>>, vector<16x32xbf16>
    %cst_60 = arith.constant dense<0.000000e+00> : vector<128x32xf32>
    %145 = tpu.matmul %143, %144, %cst_60 {dimension_numbers = #tpu.dot_dimension_numbers<[1], [0], [0], [1], [0, 0, 1, 1], [], []>} : vector<128x16xbf16>, vector<16x32xbf16>, vector<128x32xf32> -> vector<128x32xf32>
    %c0_61 = arith.constant 0 : index
    %c0_62 = arith.constant 0 : index
    %146 = vector.load %arg9[%c0_61, %c0_62] : memref<1x32xf32, #tpu.memory_space<vmem>>, vector<1x32xf32>
    %147 = vector.broadcast %146 : vector<1x32xf32> to vector<128x32xf32>
    %148 = arith.addf %145, %147 : vector<128x32xf32>
    %149 = arith.truncf %148 : vector<128x32xf32> to vector<128x32xbf16>
    %c0_63 = arith.constant 0 : index
    %c0_64 = arith.constant 0 : index
    %c0_65 = arith.constant 0 : index
    %150 = vector.load %arg10[%c0_63, %c0_64, %c0_65] : memref<1x128x32xbf16, #tpu.memory_space<vmem>>, vector<1x128x32xbf16>
    %151 = vector.shape_cast %150 : vector<1x128x32xbf16> to vector<128x32xbf16>
    %152 = vector.shape_cast %149 : vector<128x32xbf16> to vector<1x128x32xbf16>
    tpu.vector_store %arg10[%c0_63, %c0_64, %c0_65], %152 {strides = array<i32>} : memref<1x128x32xbf16, #tpu.memory_space<vmem>>, vector<1x128x32xbf16>,
    %cst_66 = arith.constant dense<0.000000e+00> : vector<32xf32>
    %153 = vector.multi_reduction <add>, %148, %cst_66 [0] : vector<128x32xf32> to vector<32xf32>
    %154 = vector.shape_cast %153 : vector<32xf32> to vector<1x32xf32>
    %155 = vector.shape_cast %154 : vector<1x32xf32> to vector<1x1x1x32xf32>
    %c0_67 = arith.constant 0 : index
    %c0_68 = arith.constant 0 : index
    %c0_69 = arith.constant 0 : index
    %c0_70 = arith.constant 0 : index
    %156 = vector.load %arg12[%c0_67, %c0_68, %c0_69, %c0_70] : memref<1x1x1x32xf32, #tpu.memory_space<vmem>>, vector<1x1x1x32xf32>
    tpu.vector_store %arg12[%c0_67, %c0_68, %c0_69, %c0_70], %155 {strides = array<i32>} : memref<1x1x1x32xf32, #tpu.memory_space<vmem>>, vector<1x1x1x32xf32>,
    return
  }
  func.func @transform_0(%arg0: i32, %arg1: i32) -> (i32, i32, i32) {
    %c0_i32 = arith.constant 0 : i32
    %c0_i32_0 = arith.constant 0 : i32
    return %arg0, %arg1, %c0_i32 : i32, i32, i32
  }
  func.func @transform_1(%arg0: i32, %arg1: i32) -> (i32, i32, i32, i32) {
    %c0_i32 = arith.constant 0 : i32
    %c0_i32_0 = arith.constant 0 : i32
    %c0_i32_1 = arith.constant 0 : i32
    return %arg0, %arg1, %c0_i32, %c0_i32_0 : i32, i32, i32, i32
  }
  func.func @transform_2(%arg0: i32, %arg1: i32) -> (i32, i32) {
    %c0_i32 = arith.constant 0 : i32
    %c0_i32_0 = arith.constant 0 : i32
    %c0_i32_1 = arith.constant 0 : i32
    return %c0_i32, %c0_i32_0 : i32, i32
  }
  func.func @transform_3(%arg0: i32, %arg1: i32) -> (i32, i32) {
    %c0_i32 = arith.constant 0 : i32
    %c0_i32_0 = arith.constant 0 : i32
    %c0_i32_1 = arith.constant 0 : i32
    return %c0_i32, %c0_i32_0 : i32, i32
  }
  func.func @transform_4(%arg0: i32, %arg1: i32) -> (i32, i32) {
    %c0_i32 = arith.constant 0 : i32
    %c0_i32_0 = arith.constant 0 : i32
    %c0_i32_1 = arith.constant 0 : i32
    return %c0_i32, %c0_i32_0 : i32, i32
  }
  func.func @transform_5(%arg0: i32, %arg1: i32) -> (i32, i32) {
    %c0_i32 = arith.constant 0 : i32
    %c0_i32_0 = arith.constant 0 : i32
    %c0_i32_1 = arith.constant 0 : i32
    return %c0_i32, %c0_i32_0 : i32, i32
  }
  func.func @transform_6(%arg0: i32, %arg1: i32) -> (i32, i32) {
    %c0_i32 = arith.constant 0 : i32
    %c0_i32_0 = arith.constant 0 : i32
    %c0_i32_1 = arith.constant 0 : i32
    return %c0_i32, %c0_i32_0 : i32, i32
  }
  func.func @transform_7(%arg0: i32, %arg1: i32) -> (i32, i32) {
    %c0_i32 = arith.constant 0 : i32
    %c0_i32_0 = arith.constant 0 : i32
    %c0_i32_1 = arith.constant 0 : i32
    return %c0_i32, %c0_i32_0 : i32, i32
  }
  func.func @transform_8(%arg0: i32, %arg1: i32) -> (i32, i32, i32) {
    %c0_i32 = arith.constant 0 : i32
    %c0_i32_0 = arith.constant 0 : i32
    return %arg0, %arg1, %c0_i32 : i32, i32, i32
  }
  func.func @transform_9(%arg0: i32, %arg1: i32) -> (i32, i32, i32) {
    %c0_i32 = arith.constant 0 : i32
    %c0_i32_0 = arith.constant 0 : i32
    return %arg0, %arg1, %c0_i32 : i32, i32, i32
  }
  func.func @transform_10(%arg0: i32, %arg1: i32) -> (i32, i32, i32, i32) {
    %c0_i32 = arith.constant 0 : i32
    %c0_i32_0 = arith.constant 0 : i32
    %c0_i32_1 = arith.constant 0 : i32
    return %arg0, %arg1, %c0_i32, %c0_i32_0 : i32, i32, i32, i32
  }
}

</mosaic_0001>

<bundles_post_ra>
// kernel: tpu_custom_call.1
= control target key start
LH: loop header
LB: loop body
LE: loop exit
PB: predicated region body
PF: predicated region fallthrough
CT: control target
= control target key end

     0   :  { %16 = vsyncpa [#allocation4], 0  ;;  %s3569_s0 = inlined_call_operand.vmem [shape: f32[2,256,64], index: 0, kind: input, shape index: {}]   ;;  %s3570_s1 = inlined_call_operand.vmem [shape: f32[2,2,32,64], index: 1, kind: input, shape index: {}]   ;;  %s3571_s2 = inlined_call_operand.vmem [shape: bf16[64,48], index: 2, kind: input, shape index: {}]   ;;  %s3572_s3 = inlined_call_operand.vmem [shape: f32[1,48], index: 3, kind: input, shape index: {}]   ;;  %s3573_s4 = inlined_call_operand.vmem [shape: f32[9,16], index: 4, kind: input, shape index: {}]   ;;  %s3574_s5 = inlined_call_operand.vmem [shape: f32[1,16], index: 5, kind: input, shape index: {}]   ;;  %s3575_s6 = inlined_call_operand.vmem [shape: bf16[16,32], index: 6, kind: input, shape index: {}]   ;;  %s3576_s7 = inlined_call_operand.vmem [shape: f32[1,32], index: 7, kind: input, shape index: {}]   ;;  %s3577_s8 = inlined_call_operand.vmem [shape: bf16[2,256,32], index: 8, kind: output, shape index: {0}]   ;;  %s3578_s9 = inlined_call_operand.vmem [shape: bf16[2,256,32], index: 9, kind: output, shape index: {1}]   ;;  %s3579_s10 = inlined_call_operand.hbm [shape: f32[2,2,1,32], index: 10, kind: output, shape index: {2}]  }
   0x1   :  { %18 = vsyncpa [#allocation4 + $0x1], 0  ;;  %s2577_s13 = smov 0   ;;  %s2579_s14 = smov 0  }
   0x2   :  { %s2581_s15 = smov 0   ;;  %s2583_s16 = smov 0  }
   0x3   :  { %s2585_s17 = smov 0   ;;  %s2587_s18 = smov 0  }
   0x4   :  { %s2589_s19 = smov 0   ;;  %s2591_s20 = smov 0  }
   0x5 LB: > { %3584 = sst [smem:[#allocation6_spill]] %s2509_s18  ;;  %s2143_s21 = sadd.s32 4294967295, %s2517_s20   ;;  %s2517_s20 = sphi %s2591_s20, %s24_s20   ;;  %s2513_s19 = sphi %s2589_s19, %s3639_s19   ;;  %s2509_s18 = sphi %s2587_s18, %s3638_s18   ;;  %s2505_s17 = sphi %s2585_s17, %s3637_s17   ;;  %s2501_s16 = sphi %s2583_s16, %s3636_s16   ;;  %s2497_s15 = sphi %s2581_s15, %s3642_s15   ;;  %s2493_s14 = sphi %s2579_s14, %s3641_s14   ;;  %s2489_s13 = sphi %s2577_s13, %s3640_s13  }
   0x6   : > { %3585 = sst [smem:[#allocation7_spill]] %s2513_s19  ;;  %s2144_s22 = sadd.s32 4294967294, %s2517_s20  }
   0x7   : > { %s33_s23 = sadd.s32 1, %s2509_s18  ;;  %s36_s24 = sadd.s32 1, %s2513_s19 }
   0x8   : > { %p34_p0 = scmp.ge.s32.totalorder %s33_s23, 2  ;;  %p293_p1 = scmp.ne.s32.totalorder %s2497_s15, %s2493_s14 }
   0x9   : > { %p294_p2 = scmp.eq.s32.totalorder %s2143_s21, 3  ;;  %p299_p5 = scmp.ne.s32.totalorder %s2493_s14, %s2489_s13 }
   0xa   : > { %s3644_s23 = smov (%p34_p0, %s33_s23), 0  ;;  %s3646_s24 = smov (!%p34_p0, %s36_s24), %s2513_s19 }
   0xb   : > { %3586 = sst [smem:[#allocation8_spill]] %s3644_s23  ;;  %s279_s25 = ssub.s32 %s2509_s18, %s3644_s23 }
   0xc   : > { %p2628_p3 = por %p294_p2, %p293_p1  ;;  %p38_p4 = scmp.ge.s32.totalorder %s3646_s24, 2 }
   0xd   : > { %p300_p6 = scmp.eq.s32.totalorder %s2144_s22, 3  ;;  %p2147_p7 = scmp.ge.s32.totalorder %s2517_s20, 1 }
   0xe   : > { %s3648_s24 = smov (%p38_p4, %s3646_s24), 0  ;;  %p361_p9 = scmp.lt.s32.totalorder %s2517_s20, 5 }
   0xf   : > { %3588 = sst [smem:[#allocation9_spill]] %s3648_s24  ;;  %p2637_p8 = por %p300_p6, %p299_p5 }
  0x10   : > { %s278_s28 = ssub.s32 %s2513_s19, %s3648_s24  ;;  %s283_s29 = sadd.s32 1, %s2497_s15 }
  0x11   : > { %s280_s30 = sor.u32 %s279_s25, %s278_s28  ;;  %p362_p10 = pnand %p2147_p7, %p361_p9 }
  0x12   : > { %p281_p11 = scmp.eq.s32.totalorder %s280_s30, 0  ;;  %v2414_v0 = vld [vmem:[%s3571_s2] sm:$0xff] (!%p362_p10)   ;;  %s2148_s22 = sshll.u32 (!%p362_p10), %s2501_s16, 4  ;;  %v2416_v2 = vld [vmem:[%s3571_s2 + $0x8] sm:$0xff] (!%p362_p10)   ;;  %v2418_v4 = vld [vmem:[%s3571_s2 + $0x10] sm:$0xff] (!%p362_p10)   ;;  %vm532_vm0 = vcmask (!%p362_p10), 523264   ;;  %v923_v40 = vlaneseq (!%p362_p10) }
  0x13   : > { %365 = sbr.rel (%p362_p10) target bundleno = 623 (0x26f), region = 52  ;;  %v2415_v1 = vld [vmem:[%s3571_s2] sm:$0xff] (!%p362_p10)   ;;  %p430_p12 = scmp.lt.s32.totalorder (!%p362_p10), %s2505_s17, 1  ;;  %2287 = vmatprep.subr.bf16.mxu0 (!%p362_p10), %v2414_v0  ;;  %v2417_v3 = vld [vmem:[%s3571_s2 + $0x8] sm:$0xff] (!%p362_p10)   ;;  %v2419_v5 = vld [vmem:[%s3571_s2 + $0x10] sm:$0xff] (!%p362_p10)   ;;  %vm899_vm1 = vcmask (!%p362_p10), 122880  }
  0x14   : > { %s2646_s11 = scalar_select %p281_p11, %s2497_s15, %s283_s29  }
  0x15   : > { %p432_p13 = scmp.lt.s32.totalorder (!%p362_p10), %s2148_s22, 31  ;;  %2311 = vmatprep.subr.bf16.mxu1 (!%p362_p10), %v2415_v1  ;;  %2288 = vmatpush3.bf16.msra.mxu0 (!%p362_p10), %v2414_v0  ;;  %v2420_v6 = vld [vmem:[%s3571_s2 + $0x18] sm:$0xff] (!%p362_p10)   ;;  %p441_p0 = scmp.lt.s32.totalorder (!%p362_p10), %s2501_s16, 1  ;;  %v2519_v38 = vmov (!%p362_p10), 0.0   ;;  %v2422_v39 = vld [vmem:[%s3575_s6] sm:$0xff] (!%p362_p10)   ;;  %v2723_v41 = vshrl.u32 (!%p362_p10), %v923_v40, 7 }
  0x16   : > { %3590 = sst [smem:[#allocation10_spill]] %s2646_s11  ;;  %2312 = vmatpush3.bf16.msra.mxu1 (!%p362_p10), %v2415_v1  ;;  %2289 = vmatprep.subr.bf16.mxu0 (!%p362_p10), %v2416_v2  ;;  %v2421_v7 = vld [vmem:[%s3571_s2 + $0x18] sm:$0xff] (!%p362_p10)   ;;  %900 = vst.msk [vmem:[#allocation2] sm:$0x1] (!%p362_p10), %vm899_vm1, %v2519_v38  ;;  %922 = vst.msk [vmem:[#allocation2 + $0xa1] sm:$0x1] (!%p362_p10), %vm899_vm1, %v2519_v38 }
  0x17   : > { %2313 = vmatprep.subr.bf16.mxu1 (!%p362_p10), %v2417_v3  ;;  %p893_p1 = scmp.eq.s32.totalorder (!%p362_p10), %s2501_s16, 1  ;;  %p887_p2 = scmp.eq.s32.totalorder (!%p362_p10), %s2501_s16, 0  ;;  %vm901_vm2 = vcmask (!%p362_p10), 130048   ;;  %v2726_v44 = vadd.s32 (!%p362_p10), 8, %v2723_v41  ;;  %v2729_v45 = vadd.s32 (!%p362_p10), 16, %v2723_v41  ;;  %v2732_v46 = vadd.s32 (!%p362_p10), 24, %v2723_v41 }
  0x18   : > { %v1191_v47 = vsub.s32 (!%p362_p10), 1, %v2723_v41  ;;  %v1259_v48 = vsub.s32 (!%p362_p10), 0, %v2723_v41  ;;  %v1164_v49 = vld [vmem:[%s3573_s4] sm:$0xff] (!%p362_p10)  ;;  %v1327_v50 = vsub.s32 (!%p362_p10), 2, %v2723_v41  ;;  %v1365_v51 = vsub.s32 (!%p362_p10), 4, %v2723_v41 }
  0x19   : > { %2290 = vmatpush3.bf16.msra.mxu0 (!%p362_p10), %v2416_v2  ;;  %v1419_v52 = vsub.s32 (!%p362_p10), 3, %v2723_v41  ;;  %v1473_v53 = vsub.s32 (!%p362_p10), 5, %v2723_v41  ;;  %v1511_v56 = vsub.s32 (!%p362_p10), 7, %v2723_v41  ;;  %v1565_v57 = vsub.s32 (!%p362_p10), 6, %v2723_v41  ;;  %v2756_v58 = vld [vmem:[%s3572_s3] ss:$0 sm:$0xff] (!%p362_p10) }
  0x1a   : > { %s2663_s12 = scalar_select %p430_p12, %s2505_s17, 1  ;;  %2314 = vmatpush3.bf16.msra.mxu1 %v2417_v3  ;;  %2291 = vmatprep.subr.bf16.mxu0 %v2418_v4  ;;  %v944_v59 = vand.u32 15, %v2723_v41  ;;  %v951_v60 = vand.u32 15, %v2726_v44  ;;  %v2761_v61 = vadd.s32 32, %v2723_v41  ;;  %v2764_v62 = vadd.s32 40, %v2723_v41 }
  0x1b   : > { %s3650_s22 = smov (!%p432_p13, %s2148_s22), 31  ;;  %2315 = vmatprep.subr.bf16.mxu1 %v2419_v5  ;;  %v958_v63 = vand.u32 15, %v2729_v45  ;;  %v965_v0 = vand.u32 15, %v2732_v46  ;;  %v2768_v1 = vrot.slane %v1164_v49, %v1191_v47  ;;  %v2770_v2 = vrot.slane %v1164_v49, %v1259_v48 }
  0x1c   : > { %s2149_s28 = sshll.u32 %s2663_s12, 5  ;;  %s2152_s19 = sshll.u32 %s2663_s12, 3  ;;  %vm2805_vm5 = vcmp.ne.s32.totalorder %v944_v59, 0  ;;  %v2814_v47 = vadd.s32 64, %v2723_v41  ;;  %v2829_v59 = vadd.s32 80, %v2723_v41  ;;  %vm2865_vm8 = vcmp.ne.s32.totalorder %v951_v60, 15 }
  0x1d   : > { %s2672_s29 = sadd.s32 %s2149_s28, %s3650_s22  ;;  %2292 = vmatpush3.bf16.msra.mxu0 %v2418_v4  ;;  %v2772_v4 = vrot.slane %v1164_v49, %v1327_v50  ;;  %s2520_s12 = smov 112   ;;  %vm2841_vm6 = vcmp.ne.s32.totalorder %v958_v63, 0  ;;  %vm2855_vm7 = vcmp.ne.s32.totalorder %v965_v0, 15  ;;  %v2860_v63 = vadd.s32 104, %v2723_v41  ;;  %v2881_v60 = vld [vmem:[%s3574_s5] ss:$0 sm:$0xff] }
  0x1e   : > { %s2150_s30 = sshll.u32 %s2672_s29, 3  ;;  %2316 = vmatpush3.bf16.msra.mxu1 %v2419_v5  ;;  %2293 = vmatprep.subr.bf16.mxu0 %v2420_v6  ;;  %v2774_v5 = vrot.slane %v1164_v49, %v1365_v51  ;;  %s2224_s22 = sshll.u32 %s2505_s17, 1 }
  0x1f   : > { %s2681_s11 = scalar_lea.vmem %s3569_s0, %s2150_s30  ;;  %2317 = vmatprep.subr.bf16.mxu1 %v2421_v7  ;;  %s1970_s21 = sadd.s32 %s2501_s16, %s2224_s22 }
  0x20   : > { %v469_v8 = vld [vmem:[%s2681_s11] sm:$0xff]  ;;  %v470_v9 = vld [vmem:[%s2681_s11 + $0x8] sm:$0xff]  ;;  %s442_s24 = scalar_select %p441_p0, %s2501_s16, 1  ;;  %v471_v11 = vld [vmem:[%s2681_s11 + $0x10] sm:$0xff] }
  0x21   : > { %v485_v10 = vpack.c.bf16 %v470_v9, %v469_v8  ;;  %v472_v12 = vld [vmem:[%s2681_s11 + $0x18] sm:$0xff]  ;;  %v473_v13 = vld [vmem:[%s2681_s11 + $0x20] sm:$0xff]  ;;  %v474_v14 = vld [vmem:[%s2681_s11 + $0x28] sm:$0xff]  ;;  %2294 = vmatpush3.bf16.msra.mxu0 %v2420_v6  ;;  %v2776_v6 = vrot.slane %v1164_v49, %v1419_v52  ;;  %v2821_v52 = vadd.s32 72, %v2723_v41 }
  0x22   : > { %s2151_s25 = sshll.u32 %s442_s24, 2  ;;  %v486_v15 = vpack.c.bf16 %v472_v12, %v471_v11  ;;  %v487_v16 = vpack.c.bf16 %v474_v14, %v473_v13  ;;  %2318 = vmatpush3.bf16.msra.mxu1 %v2421_v7  ;;  %v475_v23 = vld [vmem:[%s2681_s11 + $0x30] sm:$0xff]  ;;  %v476_v24 = vld [vmem:[%s2681_s11 + $0x38] sm:$0xff]  ;;  %v477_v25 = vld [vmem:[%s2681_s11 + $0x40] sm:$0xff]  ;;  %v2778_v7 = vrot.slane %v1164_v49, %v1473_v53  ;;  %v2783_v11 = vrot.slane %v1164_v49, %v1565_v57 }
  0x23   : > { %2295 = vmatprep.mubr.msk.bf16.mxu0 %vm532_vm0, %v485_v10  ;;  %s445_s28 = sadd.s32 %s2152_s19, %s2151_s25  ;;  %v478_v26 = vld [vmem:[%s2681_s11 + $0x48] sm:$0xff]  ;;  %v488_v27 = vpack.c.bf16 %v476_v24, %v475_v23  ;;  %v479_v29 = vld [vmem:[%s2681_s11 + $0x50] sm:$0xff]  ;;  %v480_v30 = vld [vmem:[%s2681_s11 + $0x58] sm:$0xff]  ;;  %2323 = vmatprep.subr.bf16.mxu1 %v2422_v39  ;;  %v2781_v10 = vrot.slane %v1164_v49, %v1511_v56  ;;  %v2786_v12 = vadd.s32 48, %v2723_v41 }
  0x24   : > { %s2153_s30 = sshll.u32 %s445_s28, 3  ;;  %2296 = vmatmul.mubr.msk.bf16.vlgmr.msra.gmra.mrb[0].mxu0 %vm532_vm0, %v486_v15  ;;  %v489_v28 = vpack.c.bf16 %v478_v26, %v477_v25  ;;  %v481_v31 = vld [vmem:[%s2681_s11 + $0x60] sm:$0xff]  ;;  %v482_v32 = vld [vmem:[%s2681_s11 + $0x68] sm:$0xff]  ;;  %v490_v33 = vpack.c.bf16 %v480_v30, %v479_v29  ;;  %v483_v35 = vld [vmem:[%s2681_s11 + $0x70] sm:$0xff] }
  0x25   : > { %s447_s23 = scalar_lea.vmem %s3570_s1, %s2153_s30  ;;  %2299 = vmatprep.mubr.msk.bf16.mxu0 %vm532_vm0, %v487_v16  ;;  %v491_v34 = vpack.c.bf16 %v482_v32, %v481_v31  ;;  %v484_v36 = vld [vmem:[%s2681_s11 + $0x78] sm:$0xff]  ;;  %v972_v16 = vand.u32 15, %v2761_v61 }
  0x26   : > { %v783_v17 = vld [vmem:[%s447_s23] sm:$0xff]  ;;  %v784_v18 = vld [vmem:[%s447_s23 + $0x8] sm:$0xff]  ;;  %v785_v19 = vld [vmem:[%s447_s23 + $0x10] sm:$0xff]  ;;  %v492_v37 = vpack.c.bf16 %v484_v36, %v483_v35  ;;  %s894_s19 = scalar_select %p893_p1, 1, 0 }
  0x27   : > { %v787_v20 = vpack.c.bf16 %v784_v18, %v783_v17  ;;  %v786_v21 = vld [vmem:[%s447_s23 + $0x18] sm:$0xff]  ;;  %s888_s24 = scalar_select %p887_p2, 1, 0  ;;  %v979_v17 = vand.u32 15, %v2764_v62  ;;  %v2792_v18 = vadd.s32 56, %v2723_v41  ;;  %vm2999_vm9 = vcmp.ne.s32.totalorder %v972_v16, 0 }
  0x28   : > { %v788_v22 = vpack.c.bf16 %v786_v21, %v785_v19  ;;  %v895_v42 = vstv %s894_s19  ;;  %s2156_s19 = sshll.u32 %s2672_s29, 2  ;;  %s427_s29 = sand.u32 1, %s2493_s14  }
  0x29   : > { %2319 = vmatprep.mubr.msk.bf16.mxu1 %vm532_vm0, %v787_v20  ;;  %v889_v43 = vstv %s888_s24  ;;  %vm2743_vm3 = vcmp.eq.s32.totalorder %v895_v42, 1  ;;  %vm3019_vm10 = vcmp.ne.s32.totalorder %v979_v17, 15  ;;  %s3399_s25 = scalar_lea.vmem %s3578_s9, %s2156_s19  ;;  %s3445_s23 = scalar_lea.vmem %s3577_s8, %s2156_s19 }
  0x2a   : > { %2320 = vmatmul.mubr.msk.bf16.vlgmr.msra.gmra.mrb[0].mxu1 %vm532_vm0, %v788_v22  ;;  %vm2747_vm4 = vcmp.eq.s32.totalorder %v889_v43, 1  ;;  %s2225_s19 = sshll.u32 %s1970_s21, 4  ;;  %s428_s24 = scalar_lea.vmem [#allocation3], %s427_s29 }
  0x2b   : > { %2324 = vmatpush3.bf16.msra.mxu1 %v2422_v39  ;;  %s1974_s11 = sshll.u32 %s428_s24, 4  ;;  %s3516_s30 = scalar_lea.hbm %s3579_s10, %s2225_s19  ;;  %s3518_s11 = int_to_ptr.vmem [resolvable:$true] %s1974_s11 }
  0x2c   : > { %2300 = vmatmul.mubr.msk.bf16.gmra.mrb[4].mxu0 %vm532_vm0, %v488_v27  ;;  %s1952_s17 = scalar_lea.sflag [#allocation4], %s427_s29  ;;  %s2423_s16 = scalar_lea.vmem %s3518_s11, 16 }
  0x2d   : > { %2303 = vmatprep.mubr.msk.bf16.mxu0 %vm532_vm0, %v489_v28  ;;  %p2424_p4 = scmp.ne.s32.totalorder %s3518_s11, %s2423_s16 }
  0x2f   : > { %p2425_p5 = pnand %p2424_p4, %p2628_p3 }
  0x31   : > { %p2426_p6 = pneg %p2425_p5 }
  0x34   : > { %2304 = vmatmul.mubr.msk.bf16.gmra.mrb[8].mxu0 %vm532_vm0, %v490_v33 }
  0x35   : > { %2307 = vmatprep.mubr.msk.bf16.mxu0 %vm532_vm0, %v491_v34  ;;  %v986_v34 = vand.u32 15, %v2786_v12 }
  0x37   : > { %vm3068_vm11 = vcmp.ne.s32.totalorder %v986_v34, 0 }
  0x3c   : > { %2308 = vmatmul.mubr.msk.bf16.gmra.mrb[12].mxu0 %vm532_vm0, %v492_v37 }
  0xf7   : > { %v2297_v3 = vpop.f32.mrb[0].mxu0 }
  0xf8   : > { %v600_v8 = vadd.f32 %v2297_v3, %v2756_v58  ;;  %v591_v9 = vpop.f32.mrb[1].mxu0  ;;  %v2832_v3 = vadd.s32 120, %v2723_v41 }
  0xf9   : > { %v592_v14 = vadd.f32 %v2756_v58, %v591_v9  ;;  %v2298_v15 = vpop.f32.mrb[2].mxu0 }
  0xfa   : > { %v656_v19 = vmax.f32 %v600_v8, 0.0  ;;  %v603_v22 = vadd.f32 %v2298_v15, %v2756_v58  ;;  %v594_v23 = vpop.f32.mrb[3].mxu0  ;;  %v2230_v24 = vpack.c.bf16 %v600_v8, %v600_v8  ;;  %v2849_v15 = vadd.s32 96, %v2723_v41 }
  0xfb   : > { %v654_v25 = vmax.f32 %v592_v14, 0.0  ;;  %v595_v28 = vadd.f32 %v2756_v58, %v594_v23  ;;  %v2228_v29 = vpack.c.bf16 %v592_v14, %v592_v14  ;;  %v2846_v14 = vadd.s32 88, %v2723_v41 }
  0xfc   : > { %906 = vst.msk [vmem:[#allocation2 + $0x21] sm:$0xff] %vm901_vm2, %v656_v19  ;;  %v657_v31 = vmax.f32 %v603_v22, 0.0  ;;  %722 = vrot.lane.b32.xlu1 %v2230_v24, %s2520_s12  ;;  %v2231_v42 = vpack.c.bf16 %v603_v22, %v603_v22 }
  0xfd   : > { %v2321_v13 = vpop.f32.mrb[0].mxu1  ;;  %904 = vst.msk [vmem:[#allocation2 + $0x11] sm:$0xff] %vm901_vm2, %v654_v25  ;;  %v655_v36 = vmax.f32 %v595_v28, 0.0  ;;  %718 = vrot.lane.b32.xlu0 %v2228_v29, %s2520_s12  ;;  %v2229_v49 = vpack.c.bf16 %v595_v28, %v595_v28 }
  0xfe   : > { %v877_v20 = vadd.f32 %v2321_v13, %v2756_v58  ;;  %v868_v21 = vpop.f32.mrb[1].mxu1  ;;  %907 = vst.msk [vmem:[#allocation2 + $0x29] sm:$0xff] %vm901_vm2, %v657_v31 }
  0xff   : > { %v869_v26 = vadd.f32 %v2756_v58, %v868_v21  ;;  %v2322_v27 = vpop.f32.mrb[2].mxu1  ;;  %905 = vst.msk [vmem:[#allocation2 + $0x19] sm:$0xff] %vm901_vm2, %v655_v36  ;;  %v2301_v51 = vpop.f32.mrb[4].mxu0 }
 0x100   : > { %v885_v30 = vmax.f32 %v877_v20, 0.0  ;;  %v880_v32 = vadd.f32 %v2322_v27, %v2756_v58  ;;  %v871_v33 = vpop.f32.mrb[3].mxu1  ;;  %v616_v56 = vadd.f32 %v2301_v51, %v2756_v58  ;;  %724 = vrot.lane.b32.xlu1 %v2231_v42, %s2520_s12  ;;  %v607_v57 = vpop.f32.mrb[5].mxu0  ;;  %v2895_v42 = vadd.s32 112, %v2723_v41 }
 0x101   : > { %v883_v35 = vmax.f32 %v869_v26, 0.0  ;;  %v872_v37 = vadd.f32 %v2756_v58, %v871_v33  ;;  %v608_v9 = vadd.f32 %v2756_v58, %v607_v57  ;;  %v2302_v54 = vpop.f32.mrb[6].mxu0  ;;  %720 = vrot.lane.b32.xlu0 %v2229_v49, %s2520_s12 }
 0x102   : > { %v897_v40 = vsel %vm2743_vm3, 0.0, %v885_v30  ;;  %v886_v43 = vmax.f32 %v880_v32, 0.0  ;;  %v660_v55 = vmax.f32 %v616_v56, 0.0  ;;  %v2234_v19 = vpack.c.bf16 %v616_v56, %v616_v56  ;;  %v610_v21 = vpop.f32.mrb[7].mxu0 }
 0x103   : > { %920 = vst.msk [vmem:[#allocation2 + $0x91] sm:$0xff] %vm901_vm2, %v897_v40  ;;  %v891_v48 = vsel %vm2747_vm4, 0.0, %v883_v35  ;;  %v884_v50 = vmax.f32 %v872_v37, 0.0  ;;  %v619_v20 = vadd.f32 %v2302_v54, %v2756_v58  ;;  %v658_v22 = vmax.f32 %v608_v9, 0.0  ;;  %v2869_v25 = vld [vmem:[#allocation2 + $0x21] sm:$0xff] }
 0x104   : > { %902 = vst.msk [vmem:[#allocation2 + $0x1] sm:$0xff] %vm901_vm2, %v891_v48  ;;  %v898_v53 = vsel %vm2743_vm3, 0.0, %v886_v43  ;;  %v611_v23 = vadd.f32 %v2756_v58, %v610_v21  ;;  %910 = vst.msk [vmem:[#allocation2 + $0x41] sm:$0xff] %vm901_vm2, %v660_v55  ;;  %v1175_v28 = vld [vmem:[#allocation2 + $0x11] sm:$0xff]  ;;  %v2232_v35 = vpack.c.bf16 %v608_v9, %v608_v9  ;;  %v2890_v37 = vmul.f32 %v2768_v1, %v2869_v25 }
 0x105   : > { %921 = vst.msk [vmem:[#allocation2 + $0x99] sm:$0xff] %vm901_vm2, %v898_v53  ;;  %v892_v8 = vsel %vm2747_vm4, 0.0, %v884_v50  ;;  %v661_v26 = vmax.f32 %v619_v20, 0.0  ;;  %v2235_v27 = vpack.c.bf16 %v619_v20, %v619_v20  ;;  %908 = vst.msk [vmem:[#allocation2 + $0x31] sm:$0xff] %vm901_vm2, %v658_v22  ;;  %730 = vrot.lane.b32.xlu0 %v2234_v19, %s2520_s12  ;;  %v1195_v31 = vmul.f32 %v2768_v1, %v1175_v28 }
 0x106   : > { %903 = vst.msk [vmem:[#allocation2 + $0x9] sm:$0xff] %vm901_vm2, %v892_v8  ;;  %v659_v44 = vmax.f32 %v611_v23, 0.0  ;;  %v1176_v36 = vld [vmem:[#allocation2 + $0x19] sm:$0xff]  ;;  %v2233_v48 = vpack.c.bf16 %v611_v23, %v611_v23  ;;  %v2901_v56 = vmul.f32 %v2774_v5, %v1175_v28  ;;  %v2905_v57 = vmul.f32 %v2774_v5, %v2869_v25 }
 0x107   : > { %911 = vst.msk [vmem:[#allocation2 + $0x49] sm:$0xff] %vm901_vm2, %v661_v26  ;;  %732 = vrot.lane.b32.xlu1 %v2235_v27, %s2520_s12  ;;  %v2892_v40 = vld [vmem:[#allocation2 + $0x18] sm:$0xff]  ;;  %v2305_v49 = vpop.f32.mrb[8].mxu0  ;;  %v1196_v51 = vmul.f32 %v2768_v1, %v1176_v36  ;;  %v1211_v54 = vadd.f32 %v2881_v60, %v1195_v31  ;;  %v1368_v43 = vmul.f32 %v2774_v5, %v1176_v36 }
 0x108   : > { %909 = vst.msk [vmem:[#allocation2 + $0x39] sm:$0xff] %vm901_vm2, %v659_v44  ;;  %v632_v41 = vadd.f32 %v2305_v49, %v2756_v58  ;;  %v623_v8 = vpop.f32.mrb[9].mxu0  ;;  %v1264_v27 = vmul.f32 %v2770_v2, %v2892_v40 }
 0x109   : > { %v624_v19 = vadd.f32 %v2756_v58, %v623_v8  ;;  %v2306_v20 = vpop.f32.mrb[10].mxu0  ;;  %726 = vrot.lane.b32.xlu0 %v2232_v35, %s2520_s12  ;;  %v1212_v22 = vadd.f32 %v2881_v60, %v1196_v51 }
 0x10a   : > { %v664_v28 = vmax.f32 %v632_v41, 0.0  ;;  %v2238_v44 = vpack.c.bf16 %v632_v41, %v632_v41  ;;  %v635_v31 = vadd.f32 %v2306_v20, %v2756_v58  ;;  %v626_v49 = vpop.f32.mrb[11].mxu0 }
 0x10b   : > { %v1173_v50 = vld [vmem:[#allocation2 + $0x1] sm:$0xff]  ;;  %728 = vrot.lane.b32.xlu1 %v2233_v48, %s2520_s12  ;;  %v662_v51 = vmax.f32 %v624_v19, 0.0  ;;  %v627_v8 = vadd.f32 %v2756_v58, %v626_v49  ;;  %v2937_v49 = vld [vmem:[#allocation2 + $0x12] sm:$0xff]  ;;  %v1280_v29 = vadd.f32 %v1264_v27, %v1212_v22 }
 0x10c   : > { %v1225_v53 = vld [vmem:[#allocation2] sm:$0xff]  ;;  %v1193_v9 = vmul.f32 %v2768_v1, %v1173_v50  ;;  %914 = vst.msk [vmem:[#allocation2 + $0x61] sm:$0xff] %vm901_vm2, %v664_v28  ;;  %v665_v41 = vmax.f32 %v635_v31, 0.0  ;;  %v2239_v20 = vpack.c.bf16 %v635_v31, %v635_v31  ;;  %v2236_v31 = vpack.c.bf16 %v624_v19, %v624_v19  ;;  %v1179_v38 = vld [vmem:[#allocation2 + $0x31] sm:$0xff] }
 0x10d   : > { %v1241_v55 = vsel %vm2805_vm5, %v1225_v53, 0.0  ;;  %v1174_v21 = vld [vmem:[#allocation2 + $0x9] sm:$0xff]  ;;  %v2923_v53 = vld [vmem:[#allocation2 + $0x1a] sm:$0xff]  ;;  %912 = vst.msk [vmem:[#allocation2 + $0x51] sm:$0xff] %vm901_vm2, %v662_v51  ;;  %v663_v32 = vmax.f32 %v627_v8, 0.0  ;;  %738 = vrot.lane.b32.xlu0 %v2238_v44, %s2520_s12  ;;  %v2237_v39 = vpack.c.bf16 %v627_v8, %v627_v8  ;;  %v1371_v34 = vmul.f32 %v2774_v5, %v1179_v38 }
 0x10e   : > { %v2915_v23 = vld [vmem:[#allocation2 + $0x10] sm:$0xff]  ;;  %v1261_v26 = vmul.f32 %v2770_v2, %v1241_v55  ;;  %v1194_v50 = vmul.f32 %v2768_v1, %v1174_v21  ;;  %v1226_v35 = vld [vmem:[#allocation2 + $0x8] sm:$0xff]  ;;  %v1209_v55 = vadd.f32 %v2881_v60, %v1193_v9  ;;  %v1312_v28 = vsel %vm2855_vm7, %v2923_v53, 0.0  ;;  %915 = vst.msk [vmem:[#allocation2 + $0x69] sm:$0xff] %vm901_vm2, %v665_v41 }
 0x10f   : > { %v1294_v30 = vld [vmem:[#allocation2 + $0xa] sm:$0xff]  ;;  %v1243_v48 = vsel %vm2841_vm6, %v2915_v23, 0.0  ;;  %v1293_v21 = vld [vmem:[#allocation2 + $0x2] sm:$0xff]  ;;  %v1262_v9 = vmul.f32 %v2770_v2, %v1226_v35  ;;  %740 = vrot.lane.b32.xlu1 %v2239_v20, %s2520_s12  ;;  %913 = vst.msk [vmem:[#allocation2 + $0x59] sm:$0xff] %vm901_vm2, %v663_v32  ;;  %v2309_v35 = vpop.f32.mrb[12].mxu0  ;;  %v1332_v22 = vmul.f32 %v2772_v4, %v1312_v28 }
 0x110   : > { %v1210_v33 = vadd.f32 %v2881_v60, %v1194_v50  ;;  %v1263_v36 = vmul.f32 %v2770_v2, %v1243_v48  ;;  %v2944_v50 = vld [vmem:[#allocation2 + $0x29] sm:$0xff]  ;;  %v1277_v51 = vadd.f32 %v1261_v26, %v1209_v55  ;;  %v1310_v44 = vsel %vm2865_vm8, %v1294_v30, 0.0  ;;  %v639_v20 = vpop.f32.mrb[13].mxu0 }
 0x111   : > { %v1329_v46 = vmul.f32 %v2772_v4, %v1293_v21  ;;  %v1330_v19 = vmul.f32 %v2772_v4, %v1310_v44  ;;  %v648_v41 = vadd.f32 %v2309_v35, %v2756_v58  ;;  %v1331_v26 = vmul.f32 %v2772_v4, %v2937_v49  ;;  %v2310_v27 = vpop.f32.mrb[14].mxu0  ;;  %734 = vrot.lane.b32.xlu0 %v2236_v31, %s2520_s12 }
 0x112   : > { %v1278_v48 = vadd.f32 %v1262_v9, %v1210_v33  ;;  %v1279_v0 = vadd.f32 %v1263_v36, %v1211_v54  ;;  %v640_v30 = vadd.f32 %v2756_v58, %v639_v20  ;;  %v1370_v54 = vmul.f32 %v2774_v5, %v2944_v50  ;;  %v642_v21 = vpop.f32.mrb[15].mxu0  ;;  %v2970_v20 = vld [vmem:[#allocation2 + $0x2a] sm:$0xff] }
 0x113   : > { %v1345_v32 = vadd.f32 %v1329_v46, %v1277_v51  ;;  %v668_v55 = vmax.f32 %v648_v41, 0.0  ;;  %v651_v8 = vadd.f32 %v2310_v27, %v2756_v58  ;;  %736 = vrot.lane.b32.xlu1 %v2237_v39, %s2520_s12  ;;  %v1401_v36 = vsel %vm2805_vm5, %v2915_v23, 0.0  ;;  %v2965_v46 = vld [vmem:[#allocation2 + $0x20] sm:$0xff] }
 0x114   : > { %v1346_v33 = vadd.f32 %v1330_v19, %v1278_v48  ;;  %v1347_v9 = vadd.f32 %v1331_v26, %v1279_v0  ;;  %v666_v28 = vmax.f32 %v640_v30, 0.0  ;;  %v2240_v44 = vpack.c.bf16 %v640_v30, %v640_v30  ;;  %v2968_v19 = vld [vmem:[#allocation2 + $0x28] sm:$0xff] }
 0x115   : > { %v643_v31 = vadd.f32 %v2756_v58, %v642_v21  ;;  %v1348_v51 = vadd.f32 %v1332_v22, %v1280_v29  ;;  %v2242_v35 = vpack.c.bf16 %v648_v41, %v648_v41  ;;  %918 = vst.msk [vmem:[#allocation2 + $0x81] sm:$0xff] %vm901_vm2, %v668_v55  ;;  %v669_v48 = vmax.f32 %v651_v8, 0.0  ;;  %v1297_v22 = vld [vmem:[#allocation2 + $0x22] sm:$0xff] }
 0x116   : > { %v1383_v39 = vadd.f32 %v2901_v56, %v1345_v32  ;;  %v1384_v0 = vadd.f32 %v1368_v43, %v1346_v33  ;;  %916 = vst.msk [vmem:[#allocation2 + $0x71] sm:$0xff] %vm901_vm2, %v666_v28  ;;  %742 = vrot.lane.b32.xlu0 %v2240_v44, %s2520_s12  ;;  %v1385_v58 = vadd.f32 %v2905_v57, %v1347_v9  ;;  %v1403_v30 = vsel %vm2841_vm6, %v2965_v46, 0.0 }
 0x117   : > { %v667_v23 = vmax.f32 %v643_v31, 0.0  ;;  %v2241_v26 = vpack.c.bf16 %v643_v31, %v643_v31  ;;  %v1386_v29 = vadd.f32 %v1370_v54, %v1348_v51  ;;  %v2243_v41 = vpack.c.bf16 %v651_v8, %v651_v8  ;;  %919 = vst.msk [vmem:[#allocation2 + $0x89] sm:$0xff] %vm901_vm2, %v669_v48 }
 0x118   : > { %v1421_v56 = vmul.f32 %v2776_v6, %v1401_v36  ;;  %v1422_v43 = vmul.f32 %v2776_v6, %v2892_v40  ;;  %v1423_v57 = vmul.f32 %v2776_v6, %v1403_v30  ;;  %v1424_v27 = vmul.f32 %v2776_v6, %v2968_v19 }
 0x119   : > { %917 = vst.msk [vmem:[#allocation2 + $0x79] sm:$0xff] %vm901_vm2, %v667_v23  ;;  %744 = vrot.lane.b32.xlu1 %v2241_v26, %s2520_s12  ;;  %v1456_v32 = vsel %vm2865_vm8, %v2923_v53, 0.0  ;;  %v1458_v33 = vsel %vm2855_vm7, %v2970_v20, 0.0  ;;  %v1475_v40 = vmul.f32 %v2778_v7, %v2937_v49  ;;  %v1477_v36 = vmul.f32 %v2778_v7, %v1297_v22  ;;  %v3010_v49 = vld [vmem:[%s3573_s4 + $0x8] ss:$0 sm:$0xff]  ;;  %v1180_v26 = vld [vmem:[#allocation2 + $0x39] sm:$0xff] }
 0x11a   : > { %v1437_v54 = vadd.f32 %v1421_v56, %v1383_v39  ;;  %v1438_v55 = vadd.f32 %v1422_v43, %v1384_v0  ;;  %v1476_v8 = vmul.f32 %v2778_v7, %v1456_v32  ;;  %746 = vrot.lane.b32.xlu0 %v2242_v35, %s2520_s12  ;;  %v1439_v53 = vadd.f32 %v1423_v57, %v1385_v58  ;;  %v3033_v58 = vld [vmem:[#allocation2 + $0x30] sm:$0xff]  ;;  %v1232_v57 = vld [vmem:[#allocation2 + $0x38] sm:$0xff] }
 0x11b   : > { %v1440_v9 = vadd.f32 %v1424_v27, %v1386_v29  ;;  %v1513_v28 = vmul.f32 %v2781_v10, %v2869_v25  ;;  %v1514_v16 = vmul.f32 %v2781_v10, %v2944_v50  ;;  %v1547_v31 = vsel %vm2805_vm5, %v2965_v46, 0.0  ;;  %v3035_v29 = vld [vmem:[#allocation2 + $0x3a] sm:$0xff] }
 0x11c   : > { %v1491_v44 = vadd.f32 %v1475_v40, %v1437_v54  ;;  %v1492_v61 = vadd.f32 %v1476_v8, %v1438_v55  ;;  %v1198_v25 = vmul.f32 %v2768_v1, %v2944_v50  ;;  %v1478_v35 = vmul.f32 %v2778_v7, %v1458_v33  ;;  %v3044_v54 = vld [vmem:[#allocation2 + $0x32] sm:$0xff] }
 0x11d   : > { %748 = vrot.lane.b32.xlu1 %v2243_v41, %s2520_s12  ;;  %v1493_v48 = vadd.f32 %v1477_v36, %v1439_v53  ;;  %v1602_v39 = vsel %vm2865_vm8, %v2970_v20, 0.0  ;;  %v1567_v62 = vmul.f32 %v2783_v11, %v1547_v31  ;;  %v1568_v17 = vmul.f32 %v2783_v11, %v2968_v19  ;;  %s2521_s12 = smov [#allocation3]  }
 0x11e   : > { %v1529_v0 = vadd.f32 %v1513_v28, %v1491_v44  ;;  %v1530_v23 = vadd.f32 %v1514_v16, %v1492_v61  ;;  %v1213_v50 = vadd.f32 %v2881_v60, %v2890_v37  ;;  %v1621_v41 = vmul.f32 %v3010_v49, %v1297_v22  ;;  %v1182_v28 = vld [vmem:[#allocation2 + $0x49] sm:$0xff]  ;;  %s2427_s18 = sshll.u32 %s2521_s12, 4  ;;  %s2428_s18 = int_to_ptr.vmem [resolvable:$false] %s2427_s18 }
 0x11f   : > { %v1622_v24 = vmul.f32 %v3010_v49, %v1602_v39  ;;  %v1042_v30 = vand.u32 15, %v2895_v42  ;;  %v1494_v27 = vadd.f32 %v1478_v35, %v1440_v9  ;;  %v1515_v32 = vmul.f32 %v2781_v10, %v1179_v38  ;;  %p2430_p7 = scmp.lt.s32.totalorder %s3518_s11, %s2428_s18 }
 0x120   : > { %v1583_v56 = vadd.f32 %v1567_v62, %v1529_v0  ;;  %v1584_v43 = vadd.f32 %v1568_v17, %v1530_v23  ;;  %v1214_v33 = vadd.f32 %v2881_v60, %v1198_v25  ;;  %v1516_v55 = vmul.f32 %v2781_v10, %v1180_v26  ;;  %v1181_v17 = vld [vmem:[#allocation2 + $0x41] sm:$0xff] }
 0x121   : > { %v1549_v37 = vsel %vm2841_vm6, %v3033_v58, 0.0  ;;  %v1604_v40 = vsel %vm2855_vm7, %v3035_v29, 0.0  ;;  %v1531_v36 = vadd.f32 %v1515_v32, %v1493_v48  ;;  %v1266_v44 = vmul.f32 %v2770_v2, %v2968_v19 }
 0x122   : > { %v1637_v8 = vadd.f32 %v1621_v41, %v1583_v56  ;;  %v1638_v53 = vadd.f32 %v1622_v24, %v1584_v43  ;;  %v1569_v9 = vmul.f32 %v2783_v11, %v1549_v37  ;;  %v1333_v61 = vmul.f32 %v2772_v4, %v1297_v22  ;;  %v1185_v24 = vld [vmem:[#allocation2 + $0x61] sm:$0xff] }
 0x123   : > { %v1532_v16 = vadd.f32 %v1516_v55, %v1494_v27  ;;  %v1570_v31 = vmul.f32 %v2783_v11, %v1232_v57  ;;  %v1623_v45 = vmul.f32 %v3010_v49, %v3044_v54  ;;  %v1624_v48 = vmul.f32 %v3010_v49, %v1604_v40 }
 0x124   : > { %v1653_v13 = vmax.f32 %v1637_v8, 0.0  ;;  %v1654_v25 = vmax.f32 %v1638_v53, 0.0  ;;  %v1585_v35 = vadd.f32 %v1569_v9, %v1531_v36  ;;  %v1202_v0 = vmul.f32 %v2768_v1, %v1182_v28 }
 0x125   : > { %v1586_v39 = vadd.f32 %v1570_v31, %v1532_v16  ;;  %v1245_v19 = vsel %vm2999_vm9, %v2965_v46, 0.0  ;;  %v1282_v23 = vadd.f32 %v1266_v44, %v1214_v33  ;;  %v1199_v56 = vmul.f32 %v2768_v1, %v1179_v38  ;;  %v1234_v33 = vld [vmem:[#allocation2 + $0x48] sm:$0xff] }
 0x126   : > { %v1669_v22 = vpack.c.bf16 %v1654_v25, %v1653_v13  ;;  %v1639_v62 = vadd.f32 %v1623_v45, %v1585_v35  ;;  %v1265_v41 = vmul.f32 %v2770_v2, %v1245_v19  ;;  %v1200_v43 = vmul.f32 %v2768_v1, %v1180_v26  ;;  %v1301_v44 = vld [vmem:[#allocation2 + $0x42] sm:$0xff] }
 0x127   : > { %v1640_v27 = vadd.f32 %v1624_v48, %v1586_v39  ;;  %v1314_v46 = vsel %vm3019_vm10, %v2970_v20, 0.0  ;;  %v3609_v37 = vand.u32 15, %v2792_v18  ;;  %v1201_v53 = vmul.f32 %v2768_v1, %v1181_v17 }
 0x128   : > { %2325 = vmatprep.mubr.msk.bf16.mxu1 %vm901_vm2, %v1669_v22  ;;  %v1655_v32 = vmax.f32 %v1639_v62, 0.0  ;;  %v1281_v55 = vadd.f32 %v1265_v41, %v1213_v50  ;;  %v1334_v12 = vmul.f32 %v2772_v4, %v1314_v46  ;;  %v1218_v20 = vadd.f32 %v2881_v60, %v1202_v0  ;;  %v3090_v50 = vld [vmem:[#allocation2 + $0x40] sm:$0xff]  ;;  %v3115_v22 = vld [vmem:[#allocation2 + $0x4a] sm:$0xff] }
 0x129   : > { %vm3082_vm12 = vcmp.ne.s32.totalorder %v3609_v37, 15  ;;  %v1656_v8 = vmax.f32 %v1640_v27, 0.0  ;;  %v1372_v36 = vmul.f32 %v2774_v5, %v1180_v26  ;;  %v1268_v9 = vmul.f32 %v2770_v2, %v1232_v57  ;;  %v3120_v46 = vld [vmem:[#allocation2 + $0x59] sm:$0xff] }
 0x12a   : > { %v1349_v16 = vadd.f32 %v1333_v61, %v1281_v55  ;;  %v1350_v38 = vadd.f32 %v1334_v12, %v1282_v23  ;;  %v1405_v18 = vsel %vm2999_vm9, %v3033_v58, 0.0  ;;  %v1270_v13 = vmul.f32 %v2770_v2, %v1234_v33 }
 0x12b   : > { %v1670_v31 = vpack.c.bf16 %v1656_v8, %v1655_v32  ;;  %v1425_v25 = vmul.f32 %v2776_v6, %v1405_v18  ;;  %v1460_v26 = vsel %vm3019_vm10, %v3035_v29, 0.0  ;;  %v1335_v35 = vmul.f32 %v2772_v4, %v3044_v54 }
 0x12c   : > { %v1387_v45 = vadd.f32 %v1371_v34, %v1349_v16  ;;  %v1388_v39 = vadd.f32 %v1372_v36, %v1350_v38  ;;  %v1426_v61 = vmul.f32 %v2776_v6, %v1232_v57  ;;  %v3105_v48 = vadd.f32 %v2881_v60, %v1201_v53  ;;  %v1183_v53 = vld [vmem:[#allocation2 + $0x51] sm:$0xff] }
 0x12d   : > { %2326 = vmatmul.mubr.msk.bf16.vlgmr.msra.gmra.mrb[4].mxu1 %vm901_vm2, %v1670_v31  ;;  %v3107_v0 = vadd.f32 %v1270_v13, %v1218_v20  ;;  %v3110_v19 = vmul.f32 %v2772_v4, %v1301_v44  ;;  %v1551_v23 = vsel %vm2999_vm9, %v3090_v50, 0.0  ;;  %v1479_v57 = vmul.f32 %v2778_v7, %v3044_v54 }
 0x12e   : > { %v1441_v62 = vadd.f32 %v1425_v25, %v1387_v45  ;;  %v1442_v41 = vadd.f32 %v1426_v61, %v1388_v39  ;;  %v1480_v27 = vmul.f32 %v2778_v7, %v1460_v26  ;;  %v1373_v32 = vmul.f32 %v2774_v5, %v1181_v17 }
 0x12f   : > { %v1374_v55 = vmul.f32 %v2774_v5, %v1182_v28  ;;  %v1517_v12 = vmul.f32 %v2781_v10, %v1181_v17  ;;  %v1518_v21 = vmul.f32 %v2781_v10, %v1182_v28  ;;  %v1571_v8 = vmul.f32 %v2783_v11, %v1551_v23  ;;  %v1236_v23 = vld [vmem:[#allocation2 + $0x58] sm:$0xff] }
 0x130   : > { %v1495_v34 = vadd.f32 %v1479_v57, %v1441_v62  ;;  %v1496_v37 = vadd.f32 %v1480_v27, %v1442_v41  ;;  %v1215_v20 = vadd.f32 %v2881_v60, %v1199_v56  ;;  %v1606_v54 = vsel %vm3019_vm10, %v3115_v22, 0.0 }
 0x131   : > { %v1204_v36 = vmul.f32 %v2768_v1, %v3120_v46  ;;  %v1216_v16 = vadd.f32 %v2881_v60, %v1200_v43  ;;  %v1247_v28 = vsel %vm3068_vm11, %v3033_v58, 0.0  ;;  %v3612_v17 = vand.u32 15, %v2814_v47 }
 0x132   : > { %v1533_v56 = vadd.f32 %v1517_v12, %v1495_v34  ;;  %v1534_v18 = vadd.f32 %v1518_v21, %v1496_v37  ;;  %v1572_v51 = vmul.f32 %v2783_v11, %v1234_v33  ;;  %v1267_v31 = vmul.f32 %v2770_v2, %v1247_v28  ;;  %v1303_v21 = vld [vmem:[#allocation2 + $0x52] sm:$0xff] }
 0x133   : > { %vm3139_vm13 = vcmp.ne.s32.totalorder %v3612_v17, 0  ;;  %v3615_v13 = vand.u32 15, %v2821_v52  ;;  %v1625_v58 = vmul.f32 %v3010_v49, %v1301_v44  ;;  %v1203_v47 = vmul.f32 %v2768_v1, %v1183_v53 }
 0x134   : > { %v1284_v25 = vadd.f32 %v1268_v9, %v1216_v16  ;;  %v1316_v26 = vsel %vm3082_vm12, %v3035_v29, 0.0  ;;  %v1587_v45 = vadd.f32 %v1571_v8, %v1533_v56  ;;  %v1588_v39 = vadd.f32 %v1572_v51, %v1534_v18  ;;  %v3167_v8 = vld [vmem:[#allocation2 + $0x50] sm:$0xff] }
 0x135   : > { %vm3147_vm14 = vcmp.ne.s32.totalorder %v3615_v13, 15  ;;  %v1626_v61 = vmul.f32 %v3010_v49, %v1606_v54  ;;  %v1283_v62 = vadd.f32 %v1267_v31, %v1215_v20  ;;  %v1428_v52 = vmul.f32 %v2776_v6, %v1234_v33 }
 0x136   : > { %v1220_v41 = vadd.f32 %v2881_v60, %v1204_v36  ;;  %v1336_v57 = vmul.f32 %v2772_v4, %v1316_v26  ;;  %v1407_v9 = vsel %vm3068_vm11, %v3090_v50, 0.0  ;;  %v1481_v27 = vmul.f32 %v2778_v7, %v1301_v44 }
 0x137   : > { %v1641_v12 = vadd.f32 %v1625_v58, %v1587_v45  ;;  %v1642_v29 = vadd.f32 %v1626_v61, %v1588_v39  ;;  %v1351_v34 = vadd.f32 %v1335_v35, %v1283_v62  ;;  %v3165_v37 = vadd.f32 %v2881_v60, %v1203_v47  ;;  %v3185_v58 = vld [vmem:[#allocation2 + $0x5a] sm:$0xff]  ;;  %v1186_v39 = vld [vmem:[#allocation2 + $0x69] sm:$0xff] }
 0x138   : > { %v1272_v33 = vmul.f32 %v2770_v2, %v1236_v23  ;;  %v1352_v20 = vadd.f32 %v1336_v57, %v1284_v25  ;;  %v1427_v54 = vmul.f32 %v2776_v6, %v1407_v9  ;;  %v1462_v44 = vsel %vm3082_vm12, %v3115_v22, 0.0 }
 0x139   : > { %v1657_v36 = vmax.f32 %v1641_v12, 0.0  ;;  %v1658_v16 = vmax.f32 %v1642_v29, 0.0  ;;  %v1389_v28 = vadd.f32 %v1373_v32, %v1351_v34  ;;  %v3177_v35 = vmul.f32 %v2772_v4, %v1303_v21 }
 0x13a   : > { %v3174_v17 = vadd.f32 %v1272_v33, %v1220_v41  ;;  %v1375_v56 = vmul.f32 %v2774_v5, %v1183_v53  ;;  %v1390_v18 = vadd.f32 %v1374_v55, %v1352_v20  ;;  %v1376_v31 = vmul.f32 %v2774_v5, %v3120_v46 }
 0x13b   : > { %v1671_v51 = vpack.c.bf16 %v1658_v16, %v1657_v36  ;;  %v1443_v13 = vadd.f32 %v1427_v54, %v1389_v28  ;;  %v1553_v32 = vsel %vm3068_vm11, %v3167_v8, 0.0  ;;  %v1430_v47 = vmul.f32 %v2776_v6, %v1236_v23  ;;  %v1238_v28 = vld [vmem:[#allocation2 + $0x68] sm:$0xff] }
 0x13c   : > { %v1444_v25 = vadd.f32 %v1428_v52, %v1390_v18  ;;  %v1482_v26 = vmul.f32 %v2778_v7, %v1462_v44  ;;  %v1483_v45 = vmul.f32 %v2778_v7, %v1303_v21  ;;  %v1519_v61 = vmul.f32 %v2781_v10, %v1183_v53 }
 0x13d   : > { %2329 = vmatprep.mubr.msk.bf16.mxu1 %vm901_vm2, %v1671_v51  ;;  %v1497_v55 = vadd.f32 %v1481_v27, %v1443_v13  ;;  %v1520_v62 = vmul.f32 %v2781_v10, %v3120_v46  ;;  %v1249_v41 = vsel %vm3139_vm13, %v3090_v50, 0.0  ;;  %v1573_v52 = vmul.f32 %v2783_v11, %v1553_v32  ;;  %v1305_v13 = vld [vmem:[#allocation2 + $0x62] sm:$0xff] }
 0x13e   : > { %v1498_v57 = vadd.f32 %v1482_v26, %v1444_v25  ;;  %v1269_v9 = vmul.f32 %v2770_v2, %v1249_v41  ;;  %v1318_v12 = vsel %vm3147_vm14, %v3115_v22, 0.0  ;;  %v3618_v27 = vand.u32 15, %v2829_v59 }
 0x13f   : > { %v1535_v46 = vadd.f32 %v1519_v61, %v1497_v55  ;;  %v1608_v50 = vsel %vm3082_vm12, %v3185_v58, 0.0  ;;  %v1206_v29 = vmul.f32 %v2768_v1, %v1186_v39  ;;  %v1338_v34 = vmul.f32 %v2772_v4, %v1318_v12  ;;  %v3237_v61 = vld [vmem:[#allocation2 + $0x60] sm:$0xff] }
 0x140   : > { %vm3204_vm15 = vcmp.ne.s32.totalorder %v3618_v27, 0  ;;  %v3621_v33 = vand.u32 15, %v2846_v14  ;;  %v1536_v59 = vadd.f32 %v1520_v62, %v1498_v57  ;;  %v1574_v22 = vmul.f32 %v2783_v11, %v1236_v23 }
 0x141   : > { %v1205_v54 = vmul.f32 %v2768_v1, %v1185_v24  ;;  %v1285_v36 = vadd.f32 %v1269_v9, %v3105_v48  ;;  %v1589_v16 = vadd.f32 %v1573_v52, %v1535_v46  ;;  %v1627_v40 = vmul.f32 %v3010_v49, %v1303_v21 }
 0x142   : > { %vm3215_vm0 = vcmp.ne.s32.totalorder %v3621_v33, 15  ;;  %v1354_v44 = vadd.f32 %v1338_v34, %v3107_v0  ;;  %v1409_v14 = vsel %vm3139_vm13, %v3167_v8, 0.0  ;;  %v1590_v18 = vadd.f32 %v1574_v22, %v1536_v59 }
 0x143   : > { %v1628_v51 = vmul.f32 %v3010_v49, %v1608_v50  ;;  %v1353_v23 = vadd.f32 %v3110_v19, %v1285_v36  ;;  %v1429_v32 = vmul.f32 %v2776_v6, %v1409_v14  ;;  %v1643_v25 = vadd.f32 %v1627_v40, %v1589_v16  ;;  %v3240_v19 = vld [vmem:[#allocation2 + $0x6a] sm:$0xff] }
 0x144   : > { %v1222_v48 = vadd.f32 %v2881_v60, %v1206_v29  ;;  %v1392_v26 = vadd.f32 %v1376_v31, %v1354_v44  ;;  %v1464_v0 = vsel %vm3147_vm14, %v3185_v58, 0.0  ;;  %v3235_v55 = vadd.f32 %v2881_v60, %v1205_v54  ;;  %v1188_v29 = vld [vmem:[#allocation2 + $0x79] sm:$0xff]  ;;  %v1187_v16 = vld [vmem:[#allocation2 + $0x71] sm:$0xff] }
 0x145   : > { %v1644_v21 = vadd.f32 %v1628_v51, %v1590_v18  ;;  %v1274_v62 = vmul.f32 %v2770_v2, %v1238_v28  ;;  %v1391_v41 = vadd.f32 %v1375_v56, %v1353_v23  ;;  %v3243_v57 = vmul.f32 %v2772_v4, %v1305_v13 }
 0x146   : > { %v1377_v31 = vmul.f32 %v2774_v5, %v1185_v24  ;;  %v1446_v52 = vadd.f32 %v1430_v47, %v1392_v26  ;;  %v1484_v9 = vmul.f32 %v2778_v7, %v1464_v0  ;;  %v1659_v12 = vmax.f32 %v1643_v25, 0.0 }
 0x147   : > { %v1660_v27 = vmax.f32 %v1644_v21, 0.0  ;;  %v1378_v46 = vmul.f32 %v2774_v5, %v1186_v39  ;;  %v1445_v50 = vadd.f32 %v1429_v32, %v1391_v41  ;;  %v3248_v34 = vadd.f32 %v1274_v62, %v1222_v48  ;;  %v1240_v21 = vld [vmem:[#allocation2 + $0x78] sm:$0xff] }
 0x148   : > { %v1500_v33 = vadd.f32 %v1484_v9, %v1446_v52  ;;  %v1522_v56 = vmul.f32 %v2781_v10, %v1186_v39  ;;  %v1555_v59 = vsel %vm3139_vm13, %v3237_v61, 0.0  ;;  %v1521_v47 = vmul.f32 %v2781_v10, %v1185_v24 }
 0x149   : > { %v1672_v22 = vpack.c.bf16 %v1660_v27, %v1659_v12  ;;  %v1499_v54 = vadd.f32 %v1483_v45, %v1445_v50  ;;  %v1610_v36 = vsel %vm3147_vm14, %v3240_v19, 0.0  ;;  %v3624_v40 = vand.u32 15, %v2849_v15 }
 0x14a   : > { %v1538_v39 = vadd.f32 %v1522_v56, %v1500_v33  ;;  %v1576_v14 = vmul.f32 %v2783_v11, %v1238_v28  ;;  %v1208_v38 = vmul.f32 %v2768_v1, %v1188_v29  ;;  %v1251_v45 = vsel %vm3204_vm15, %v3167_v8, 0.0 }
 0x14b   : > { %vm3260_vm1 = vcmp.ne.s32.totalorder %v3624_v40, 0  ;;  %v3627_v24 = vand.u32 15, %v2860_v63  ;;  %2330 = vmatmul.mubr.msk.bf16.gmra.mrb[8].mxu1 %vm901_vm2, %v1672_v22  ;;  %v1537_v15 = vadd.f32 %v1521_v47, %v1499_v54  ;;  %v1575_v18 = vmul.f32 %v2783_v11, %v1555_v59  ;;  %v1239_v59 = vld [vmem:[#allocation2 + $0x70] sm:$0xff]  ;;  %v1308_v22 = vld [vmem:[#allocation2 + $0x7a] sm:$0xff] }
 0x14c   : > { %v1271_v51 = vmul.f32 %v2770_v2, %v1251_v45  ;;  %v1320_v23 = vsel %vm3215_vm0, %v3185_v58, 0.0  ;;  %v1592_v32 = vadd.f32 %v1576_v14, %v1538_v39  ;;  %v1630_v8 = vmul.f32 %v3010_v49, %v1610_v36 }
 0x14d   : > { %vm3271_vm3 = vcmp.ne.s32.totalorder %v3627_v24, 15  ;;  %v1207_v63 = vmul.f32 %v2768_v1, %v1187_v16  ;;  %v1340_v25 = vmul.f32 %v2772_v4, %v1320_v23  ;;  %v1432_v48 = vmul.f32 %v2776_v6, %v1238_v28  ;;  %v1307_v1 = vld [vmem:[#allocation2 + $0x72] sm:$0xff] }
 0x14e   : > { %v1591_v26 = vadd.f32 %v1575_v18, %v1537_v15  ;;  %v1629_v0 = vmul.f32 %v3010_v49, %v1305_v13  ;;  %v1287_v62 = vadd.f32 %v1271_v51, %v3165_v37  ;;  %vm3289_vm4 = vcmp.ne.s32.totalorder %v1042_v30, 0 }
 0x14f   : > { %v1646_v58 = vadd.f32 %v1630_v8, %v1592_v32  ;;  %v1224_v52 = vadd.f32 %v2881_v60, %v1208_v38  ;;  %v1356_v9 = vadd.f32 %v1340_v25, %v3174_v17  ;;  %v1411_v28 = vsel %vm3204_vm15, %v3237_v61, 0.0 }
 0x150   : > { %v1485_v12 = vmul.f32 %v2778_v7, %v1305_v13  ;;  %v1645_v27 = vadd.f32 %v1629_v0, %v1591_v26  ;;  %v1355_v37 = vadd.f32 %v3177_v35, %v1287_v62  ;;  %v1466_v42 = vsel %vm3215_vm0, %v3240_v19, 0.0 }
 0x151   : > { %v1662_v30 = vmax.f32 %v1646_v58, 0.0  ;;  %v3304_v50 = vadd.f32 %v2881_v60, %v1207_v63  ;;  %v1276_v33 = vmul.f32 %v2770_v2, %v1240_v21  ;;  %v1394_v17 = vadd.f32 %v1378_v46, %v1356_v9  ;;  %v1361_v9 = vld [vmem:[#allocation2 + $0x81] sm:$0xff] }
 0x152   : > { %v1661_v56 = vmax.f32 %v1645_v27, 0.0  ;;  %v3308_v54 = vmul.f32 %v2772_v4, %v1307_v1  ;;  %v1393_v13 = vadd.f32 %v1377_v31, %v1355_v37  ;;  %v1431_v35 = vmul.f32 %v2776_v6, %v1411_v28  ;;  %v1362_v27 = vld [vmem:[#allocation2 + $0x89] sm:$0xff] }
 0x153   : > { %v3632_v47 = vand.u32 15, %v2832_v3  ;;  %v3317_v60 = vadd.f32 %v1276_v33, %v1224_v52  ;;  %v1379_v40 = vmul.f32 %v2774_v5, %v1187_v16  ;;  %v1448_v46 = vadd.f32 %v1432_v48, %v1394_v17 }
 0x154   : > { %v1486_v39 = vmul.f32 %v2778_v7, %v1466_v42  ;;  %v1673_v14 = vpack.c.bf16 %v1662_v30, %v1661_v56  ;;  %v1380_v38 = vmul.f32 %v2774_v5, %v1188_v29  ;;  %v1447_v45 = vadd.f32 %v1431_v35, %v1393_v13  ;;  %v1399_v56 = vld [vmem:[#allocation2 + $0x80] sm:$0xff]  ;;  %v1454_v35 = vld [vmem:[#allocation2 + $0x8a] sm:$0xff] }
 0x155   : > { %vm3313_vm5 = vcmp.ne.s32.totalorder %v3632_v47, 15  ;;  %v1524_v31 = vmul.f32 %v2781_v10, %v1188_v29  ;;  %v1557_v3 = vsel %vm3204_vm15, %v1239_v59, 0.0  ;;  %v1612_v15 = vsel %vm3215_vm0, %v1308_v22, 0.0 }
 0x156   : > { %v1502_v24 = vadd.f32 %v1486_v39, %v1448_v46  ;;  %v1253_v18 = vsel %vm3260_vm1, %v3237_v61, 0.0  ;;  %2333 = vmatprep.mubr.msk.bf16.mxu1 %vm901_vm2, %v1673_v14  ;;  %v1501_v51 = vadd.f32 %v1485_v12, %v1447_v45  ;;  %v1523_v23 = vmul.f32 %v2781_v10, %v1187_v16 }
 0x157   : > { %v1273_v32 = vmul.f32 %v2770_v2, %v1253_v18  ;;  %v1322_v29 = vsel %vm3271_vm3, %v3240_v19, 0.0  ;;  %v1434_v53 = vmul.f32 %v2776_v6, %v1240_v21  ;;  %v1578_v20 = vmul.f32 %v2783_v11, %v1240_v21 }
 0x158   : > { %v1540_v8 = vadd.f32 %v1524_v31, %v1502_v24  ;;  %v1342_v63 = vmul.f32 %v2772_v4, %v1322_v29  ;;  %v1539_v25 = vadd.f32 %v1523_v23, %v1501_v51  ;;  %v1577_v61 = vmul.f32 %v2783_v11, %v1557_v3 }
 0x159   : > { %v1632_v48 = vmul.f32 %v3010_v49, %v1612_v15  ;;  %v1289_v16 = vadd.f32 %v1273_v32, %v3235_v55  ;;  %v1255_v0 = vsel %vm3289_vm4, %v1239_v59, 0.0  ;;  %v1413_v62 = vsel %vm3260_vm1, %v1239_v59, 0.0  ;;  %v1453_v15 = vld [vmem:[#allocation2 + $0x82] sm:$0xff] }
 0x15a   : > { %v1594_v26 = vadd.f32 %v1578_v20, %v1540_v8  ;;  %v1358_v19 = vadd.f32 %v1342_v63, %v3248_v34  ;;  %v1593_v58 = vadd.f32 %v1577_v61, %v1539_v25  ;;  %v1631_v21 = vmul.f32 %v3010_v49, %v1307_v1  ;;  %v1508_v61 = vld [vmem:[#allocation2 + $0x99] sm:$0xff] }
 0x15b   : > { %v1357_v52 = vadd.f32 %v3243_v57, %v1289_v16  ;;  %v1433_v28 = vmul.f32 %v2776_v6, %v1413_v62  ;;  %v1324_v55 = vsel %vm3313_vm5, %v1308_v22, 0.0  ;;  %v1468_v34 = vsel %vm3271_vm3, %v1308_v22, 0.0  ;;  %v1400_v22 = vld [vmem:[#allocation2 + $0x88] sm:$0xff]  ;;  %v1600_v62 = vld [vmem:[#allocation2 + $0x9a] sm:$0xff] }
 0x15c   : > { %v1648_v12 = vadd.f32 %v1632_v48, %v1594_v26  ;;  %v1396_v37 = vadd.f32 %v1380_v38, %v1358_v19  ;;  %v1487_v42 = vmul.f32 %v2778_v7, %v1307_v1  ;;  %v1647_v30 = vadd.f32 %v1631_v21, %v1593_v58  ;;  %v1545_v19 = vld [vmem:[#allocation2 + $0x90] sm:$0xff] }
 0x15d   : > { %v1275_v33 = vmul.f32 %v2770_v2, %v1255_v0  ;;  %v1395_v17 = vadd.f32 %v1379_v40, %v1357_v52  ;;  %v1381_v59 = vmul.f32 %v2774_v5, %v1361_v9  ;;  %v1488_v47 = vmul.f32 %v2778_v7, %v1468_v34  ;;  %v1507_v52 = vld [vmem:[#allocation2 + $0x91] sm:$0xff] }
 0x15e   : > { %v1664_v57 = vmax.f32 %v1648_v12, 0.0  ;;  %v1450_v13 = vadd.f32 %v1434_v53, %v1396_v37  ;;  %v1663_v46 = vmax.f32 %v1647_v30, 0.0  ;;  %v1344_v39 = vmul.f32 %v2772_v4, %v1324_v55 }
 0x15f   : > { %v1382_v14 = vmul.f32 %v2774_v5, %v1362_v27  ;;  %v1449_v38 = vadd.f32 %v1433_v28, %v1395_v17  ;;  %v1415_v1 = vsel %vm3289_vm4, %v1399_v56, 0.0  ;;  %v1526_v40 = vmul.f32 %v2781_v10, %v1362_v27  ;;  %v1599_v17 = vld [vmem:[#allocation2 + $0x92] sm:$0xff] }
 0x160   : > { %v1504_v2 = vadd.f32 %v1488_v47, %v1450_v13  ;;  %v1559_v45 = vsel %vm3260_vm1, %v1399_v56, 0.0  ;;  %v1674_v31 = vpack.c.bf16 %v1664_v57, %v1663_v46  ;;  %v1525_v3 = vmul.f32 %v2781_v10, %v1361_v9  ;;  %v1546_v9 = vld [vmem:[#allocation2 + $0x98] sm:$0xff] }
 0x161   : > { %v1503_v24 = vadd.f32 %v1487_v42, %v1449_v38  ;;  %v1614_v4 = vsel %vm3271_vm3, %v1454_v35, 0.0  ;;  %v1580_v18 = vmul.f32 %v2783_v11, %v1400_v22  ;;  %v1291_v51 = vadd.f32 %v1275_v33, %v3304_v50 }
 0x162   : > { %v1542_v5 = vadd.f32 %v1526_v40, %v1504_v2  ;;  %v1360_v23 = vadd.f32 %v1344_v39, %v3317_v60  ;;  %2334 = vmatmul.mubr.msk.bf16.gmra.mrb[12].mxu1 %vm901_vm2, %v1674_v31  ;;  %v1436_v44 = vmul.f32 %v2776_v6, %v1400_v22  ;;  %v1470_v32 = vsel %vm3313_vm5, %v1454_v35, 0.0 }
 0x163   : > { %v1541_v29 = vadd.f32 %v1525_v3, %v1503_v24  ;;  %v1579_v53 = vmul.f32 %v2783_v11, %v1559_v45  ;;  %v1634_v8 = vmul.f32 %v3010_v49, %v1614_v4  ;;  %v1359_v20 = vadd.f32 %v3308_v54, %v1291_v51  ;;  %v3437_v51 = vld [vmem:[%s3576_s7] ss:$0 sm:$0xff] }
 0x164   : > { %v1596_v43 = vadd.f32 %v1580_v18, %v1542_v5  ;;  %v1398_v63 = vadd.f32 %v1382_v14, %v1360_v23  ;;  %v1435_v50 = vmul.f32 %v2776_v6, %v1415_v1  ;;  %v1633_v60 = vmul.f32 %v3010_v49, %v1453_v15 }
 0x165   : > { %v1595_v25 = vadd.f32 %v1579_v53, %v1541_v29  ;;  %v1490_v48 = vmul.f32 %v2778_v7, %v1470_v32  ;;  %v1397_v26 = vadd.f32 %v1381_v59, %v1359_v20  ;;  %v1489_v58 = vmul.f32 %v2778_v7, %v1453_v15 }
 0x166   : > { %v1650_v16 = vadd.f32 %v1634_v8, %v1596_v43  ;;  %v1452_v0 = vadd.f32 %v1436_v44, %v1398_v63  ;;  %v1528_v6 = vmul.f32 %v2781_v10, %v1508_v61  ;;  %v1561_v27 = vsel %vm3289_vm4, %v1545_v19, 0.0 }
 0x167   : > { %v1649_v21 = vadd.f32 %v1633_v60, %v1595_v25  ;;  %v1451_v28 = vadd.f32 %v1435_v50, %v1397_v26  ;;  %v1616_v37 = vsel %vm3313_vm5, %v1600_v62, 0.0  ;;  %v1527_v42 = vmul.f32 %v2781_v10, %v1507_v52 }
 0x168   : > { %v1666_v54 = vmax.f32 %v1650_v16, 0.0  ;;  %v1506_v12 = vadd.f32 %v1490_v48, %v1452_v0  ;;  %v1582_v30 = vmul.f32 %v2783_v11, %v1546_v9  ;;  %v1581_v57 = vmul.f32 %v2783_v11, %v1561_v27 }
 0x169   : > { %v1665_v55 = vmax.f32 %v1649_v21, 0.0  ;;  %v1505_v34 = vadd.f32 %v1489_v58, %v1451_v28  ;;  %v1636_v41 = vmul.f32 %v3010_v49, %v1616_v37  ;;  %v1635_v13 = vmul.f32 %v3010_v49, %v1599_v17 }
 0x16a   : > { %v1544_v7 = vadd.f32 %v1528_v6, %v1506_v12  ;;  %vm766_vm6 = vcmask 257024   ;;  %vm1931_vm7 = vcmask 253952  }
 0x16b   : > { %v1675_v33 = vpack.c.bf16 %v1666_v54, %v1665_v55  ;;  %v1543_v56 = vadd.f32 %v1527_v42, %v1505_v34 }
 0x16c   : > { %v1598_v59 = vadd.f32 %v1582_v30, %v1544_v7 }
 0x16d   : > { %2337 = vmatprep.mubr.msk.bf16.mxu1 %vm901_vm2, %v1675_v33  ;;  %v1597_v36 = vadd.f32 %v1581_v57, %v1543_v56 }
 0x16e   : > { %v1652_v35 = vadd.f32 %v1636_v41, %v1598_v59  ;;  %v723_v49 = vpop.permute.xlu1 %722 }
 0x16f   : > { %v1651_v10 = vadd.f32 %v1635_v13, %v1597_v36  ;;  %769 = vst.msk [vmem:[%s3399_s25 + $0x8] sm:$0xf] %vm766_vm6, %v723_v49  ;;  %v719_v39 = vpop.permute.xlu0 %718 }
 0x170   : > { %v1668_v47 = vmax.f32 %v1652_v35, 0.0  ;;  %767 = vst.msk [vmem:[%s3399_s25] sm:$0xf] %vm766_vm6, %v719_v39 }
 0x171   : > { %v1667_v46 = vmax.f32 %v1651_v10, 0.0 }
 0x172   : > { %v725_v14 = vpop.permute.xlu1 %724 }
 0x173   : > { %v1676_v11 = vpack.c.bf16 %v1668_v47, %v1667_v46  ;;  %770 = vst.msk [vmem:[%s3399_s25 + $0xc] sm:$0xf] %vm766_vm6, %v725_v14  ;;  %v721_v22 = vpop.permute.xlu0 %720 }
 0x174   : > { %768 = vst.msk [vmem:[%s3399_s25 + $0x4] sm:$0xf] %vm766_vm6, %v721_v22 }
 0x175   : > { %2338 = vmatmul.mubr.msk.bf16.gmra.mrb[16].mxu1 %vm901_vm2, %v1676_v11  ;;  %vm1893_vm2 = vcmask 261120  }
 0x177   : > { %v731_v38 = vpop.permute.xlu0 %730 }
 0x178   : > { %773 = vst.msk [vmem:[%s3399_s25 + $0x18] sm:$0xf] %vm766_vm6, %v731_v38 }
 0x179   : > { %v733_v1 = vpop.permute.xlu1 %732 }
 0x17a   : > { %774 = vst.msk [vmem:[%s3399_s25 + $0x1c] sm:$0xf] %vm766_vm6, %v733_v1 }
 0x17b   : > { %v727_v2 = vpop.permute.xlu0 %726 }
 0x17c   : > { %771 = vst.msk [vmem:[%s3399_s25 + $0x10] sm:$0xf] %vm766_vm6, %v727_v2 }
 0x17d   : > { %v729_v40 = vpop.permute.xlu1 %728 }
 0x17e   : > { %772 = vst.msk [vmem:[%s3399_s25 + $0x14] sm:$0xf] %vm766_vm6, %v729_v40 }
 0x17f   : > { %v739_v45 = vpop.permute.xlu0 %738 }
 0x180   : > { %777 = vst.msk [vmem:[%s3399_s25 + $0x28] sm:$0xf] %vm766_vm6, %v739_v45 }
 0x181   : > { %v741_v31 = vpop.permute.xlu1 %740 }
 0x182   : > { %778 = vst.msk [vmem:[%s3399_s25 + $0x2c] sm:$0xf] %vm766_vm6, %v741_v31 }
 0x183   : > { %v735_v24 = vpop.permute.xlu0 %734 }
 0x184   : > { %775 = vst.msk [vmem:[%s3399_s25 + $0x20] sm:$0xf] %vm766_vm6, %v735_v24 }
 0x185   : > { %v737_v3 = vpop.permute.xlu1 %736 }
 0x186   : > { %776 = vst.msk [vmem:[%s3399_s25 + $0x24] sm:$0xf] %vm766_vm6, %v737_v3 }
 0x188   : > { %v743_v4 = vpop.permute.xlu0 %742 }
 0x189   : > { %779 = vst.msk [vmem:[%s3399_s25 + $0x30] sm:$0xf] %vm766_vm6, %v743_v4 }
 0x18b   : > { %v745_v15 = vpop.permute.xlu1 %744 }
 0x18c   : > { %780 = vst.msk [vmem:[%s3399_s25 + $0x34] sm:$0xf] %vm766_vm6, %v745_v15  ;;  %v747_v5 = vpop.permute.xlu0 %746 }
 0x18d   : > { %781 = vst.msk [vmem:[%s3399_s25 + $0x38] sm:$0xf] %vm766_vm6, %v747_v5 }
 0x18f   : > { %v749_v18 = vpop.permute.xlu1 %748 }
 0x190   : > { %782 = vst.msk [vmem:[%s3399_s25 + $0x3c] sm:$0xf] %vm766_vm6, %v749_v18 }
 0x200   : > { %v2327_v23 = vpop.f32.mrb[4].mxu1 }
 0x201   : > { %v1759_v44 = vadd.f32 %v2327_v23, %v3437_v51  ;;  %v1750_v32 = vpop.f32.mrb[5].mxu1 }
 0x202   : > { %v1751_v29 = vadd.f32 %v3437_v51, %v1750_v32  ;;  %v2328_v53 = vpop.f32.mrb[6].mxu1 }
 0x203   : > { %v2246_v43 = vpack.c.bf16 %v1759_v44, %v1759_v44  ;;  %v1762_v8 = vadd.f32 %v2328_v53, %v3437_v51  ;;  %v1753_v20 = vpop.f32.mrb[7].mxu1  ;;  %v1897_v26 = vsel %vm1893_vm2, %v1759_v44, 0.0 }
 0x204   : > { %v2244_v63 = vpack.c.bf16 %v1751_v29, %v1751_v29  ;;  %v1754_v50 = vadd.f32 %v3437_v51, %v1753_v20  ;;  %v1894_v60 = vsel %vm1893_vm2, %v1751_v29, 0.0 }
 0x205   : > { %1879 = vst.msk [vmem:[%s3445_s23 + $0x8] sm:$0xf] %vm766_vm6, %v2246_v43  ;;  %v2247_v25 = vpack.c.bf16 %v1762_v8, %v1762_v8  ;;  %v1899_v19 = vsel %vm1893_vm2, %v1762_v8, 0.0 }
 0x206   : > { %1877 = vst.msk [vmem:[%s3445_s23] sm:$0xf] %vm766_vm6, %v2244_v63  ;;  %v2245_v61 = vpack.c.bf16 %v1754_v50, %v1754_v50  ;;  %v1895_v48 = vsel %vm1893_vm2, %v1754_v50, 0.0 }
 0x207   : > { %1880 = vst.msk [vmem:[%s3445_s23 + $0xc] sm:$0xf] %vm766_vm6, %v2247_v25  ;;  %v1896_v16 = vadd.f32 %v1895_v48, %v1894_v60 }
 0x208   : > { %1878 = vst.msk [vmem:[%s3445_s23 + $0x4] sm:$0xf] %vm766_vm6, %v2245_v61 }
 0x209   : > { %v1898_v0 = vadd.f32 %v1897_v26, %v1896_v16 }
 0x20b   : > { %v1900_v62 = vadd.f32 %v1899_v19, %v1898_v0 }
 0x21e   : > { %v2331_v58 = vpop.f32.mrb[8].mxu1 }
 0x21f   : > { %v1775_v21 = vadd.f32 %v2331_v58, %v3437_v51  ;;  %v1766_v52 = vpop.f32.mrb[9].mxu1 }
 0x220   : > { %v1767_v9 = vadd.f32 %v3437_v51, %v1766_v52  ;;  %v2332_v54 = vpop.f32.mrb[10].mxu1 }
 0x221   : > { %v2250_v28 = vpack.c.bf16 %v1775_v21, %v1775_v21  ;;  %v1778_v12 = vadd.f32 %v2332_v54, %v3437_v51  ;;  %v1769_v6 = vpop.f32.mrb[11].mxu1  ;;  %v1905_v17 = vsel %vm1893_vm2, %v1775_v21, 0.0 }
 0x222   : > { %v2248_v55 = vpack.c.bf16 %v1767_v9, %v1767_v9  ;;  %v1901_v27 = vsel %vm1893_vm2, %v1767_v9, 0.0  ;;  %v1770_v37 = vadd.f32 %v3437_v51, %v1769_v6 }
 0x223   : > { %1883 = vst.msk [vmem:[%s3445_s23 + $0x18] sm:$0xf] %vm766_vm6, %v2250_v28  ;;  %v1902_v34 = vadd.f32 %v1901_v27, %v1900_v62  ;;  %v2251_v42 = vpack.c.bf16 %v1778_v12, %v1778_v12  ;;  %v1907_v57 = vsel %vm1893_vm2, %v1778_v12, 0.0 }
 0x224   : > { %1881 = vst.msk [vmem:[%s3445_s23 + $0x10] sm:$0xf] %vm766_vm6, %v2248_v55  ;;  %v2249_v7 = vpack.c.bf16 %v1770_v37, %v1770_v37  ;;  %v1903_v30 = vsel %vm1893_vm2, %v1770_v37, 0.0 }
 0x225   : > { %1884 = vst.msk [vmem:[%s3445_s23 + $0x1c] sm:$0xf] %vm766_vm6, %v2251_v42  ;;  %v1904_v33 = vadd.f32 %v1903_v30, %v1902_v34 }
 0x226   : > { %1882 = vst.msk [vmem:[%s3445_s23 + $0x14] sm:$0xf] %vm766_vm6, %v2249_v7 }
 0x227   : > { %v1906_v56 = vadd.f32 %v1905_v17, %v1904_v33 }
 0x229   : > { %v1908_v59 = vadd.f32 %v1907_v57, %v1906_v56 }
 0x235   : > { %v2335_v41 = vpop.f32.mrb[12].mxu1 }
 0x236   : > { %v1791_v36 = vadd.f32 %v2335_v41, %v3437_v51  ;;  %v1782_v13 = vpop.f32.mrb[13].mxu1 }
 0x237   : > { %v1783_v35 = vadd.f32 %v3437_v51, %v1782_v13  ;;  %v2336_v10 = vpop.f32.mrb[14].mxu1 }
 0x238   : > { %v2254_v47 = vpack.c.bf16 %v1791_v36, %v1791_v36  ;;  %v1794_v46 = vadd.f32 %v2336_v10, %v3437_v51  ;;  %v1785_v11 = vpop.f32.mrb[15].mxu1  ;;  %v1913_v45 = vsel %vm1893_vm2, %v1791_v36, 0.0 }
 0x239   : > { %v2252_v49 = vpack.c.bf16 %v1783_v35, %v1783_v35  ;;  %v1909_v39 = vsel %vm1893_vm2, %v1783_v35, 0.0  ;;  %v1786_v14 = vadd.f32 %v3437_v51, %v1785_v11 }
 0x23a   : > { %1887 = vst.msk [vmem:[%s3445_s23 + $0x28] sm:$0xf] %vm766_vm6, %v2254_v47  ;;  %v1910_v22 = vadd.f32 %v1909_v39, %v1908_v59  ;;  %v2255_v38 = vpack.c.bf16 %v1794_v46, %v1794_v46  ;;  %v1915_v24 = vsel %vm1893_vm2, %v1794_v46, 0.0 }
 0x23b   : > { %1885 = vst.msk [vmem:[%s3445_s23 + $0x20] sm:$0xf] %vm766_vm6, %v2252_v49  ;;  %v2253_v1 = vpack.c.bf16 %v1786_v14, %v1786_v14  ;;  %v1911_v2 = vsel %vm1893_vm2, %v1786_v14, 0.0 }
 0x23c   : > { %1888 = vst.msk [vmem:[%s3445_s23 + $0x2c] sm:$0xf] %vm766_vm6, %v2255_v38  ;;  %v1912_v40 = vadd.f32 %v1911_v2, %v1910_v22 }
 0x23d   : > { %1886 = vst.msk [vmem:[%s3445_s23 + $0x24] sm:$0xf] %vm766_vm6, %v2253_v1 }
 0x23e   : > { %v1914_v31 = vadd.f32 %v1913_v45, %v1912_v40 }
 0x240   : > { %v1916_v3 = vadd.f32 %v1915_v24, %v1914_v31 }
 0x248   : > { %v2339_v4 = vpop.f32.mrb[16].mxu1 }
 0x249   : > { %v1807_v15 = vadd.f32 %v2339_v4, %v3437_v51  ;;  %v1798_v5 = vpop.f32.mrb[17].mxu1 }
 0x24a   : > { %v1799_v18 = vadd.f32 %v3437_v51, %v1798_v5  ;;  %v2340_v23 = vpop.f32.mrb[18].mxu1 }
 0x24b   : > { %v2258_v44 = vpack.c.bf16 %v1807_v15, %v1807_v15  ;;  %v1810_v32 = vadd.f32 %v2340_v23, %v3437_v51  ;;  %v1801_v29 = vpop.f32.mrb[19].mxu1  ;;  %v1921_v61 = vsel %vm1893_vm2, %v1807_v15, 0.0 }
 0x24c   : > { %v2256_v53 = vpack.c.bf16 %v1799_v18, %v1799_v18  ;;  %v1917_v43 = vsel %vm1893_vm2, %v1799_v18, 0.0  ;;  %v1802_v8 = vadd.f32 %v3437_v51, %v1801_v29 }
 0x24d   : > { %1891 = vst.msk [vmem:[%s3445_s23 + $0x38] sm:$0xf] %vm766_vm6, %v2258_v44  ;;  %v1918_v20 = vadd.f32 %v1917_v43, %v1916_v3  ;;  %v2259_v63 = vpack.c.bf16 %v1810_v32, %v1810_v32  ;;  %v1923_v51 = vsel %vm1893_vm2, %v1810_v32, 0.0 }
 0x24e   : > { %1889 = vst.msk [vmem:[%s3445_s23 + $0x30] sm:$0xf] %vm766_vm6, %v2256_v53  ;;  %v2257_v50 = vpack.c.bf16 %v1802_v8, %v1802_v8  ;;  %v1919_v25 = vsel %vm1893_vm2, %v1802_v8, 0.0 }
 0x24f   : > { %1892 = vst.msk [vmem:[%s3445_s23 + $0x3c] sm:$0xf] %vm766_vm6, %v2259_v63  ;;  %v1920_v60 = vadd.f32 %v1919_v25, %v1918_v20 }
 0x250   : > { %1890 = vst.msk [vmem:[%s3445_s23 + $0x34] sm:$0xf] %vm766_vm6, %v2257_v50  ;;  %s2429_s23 = scalar_lea.vmem %s2428_s18, 32 }
 0x251   : > { %v1922_v48 = vadd.f32 %v1921_v61, %v1920_v60  ;;  %p2431_p9 = scmp.lt.s32.totalorder %s2429_s23, %s2423_s16 }
 0x253   : > { %v1924_v16 = vadd.f32 %v1923_v51, %v1922_v48  ;;  %p2432_p10 = por %p2431_p9, %p2430_p7 }
 0x255   : > { %v1925_v26 = vrot.slane %v1924_v16, 4  ;;  %p2433_p11 = pnand %p2432_p10, %p2426_p6 }
 0x257   : > { %v1926_v0 = vadd.f32 %v1925_v26, %v1924_v16 }
 0x259   : > { %v1927_v19 = vrot.slane %v1926_v0, 2 }
 0x25b   : > { %v1928_v62 = vadd.f32 %v1927_v19, %v1926_v0 }
 0x25d   : > { %v1929_v58 = vrot.slane %v1928_v62, 1 }
 0x25f   : > { %v1930_v21 = vadd.f32 %v1929_v58, %v1928_v62 }
 0x261   : > { %1932 = vst.msk [vmem:[%s428_s24] sm:$0x1] %vm1931_vm7, %v1930_v21 }
 0x262   : > { %2436 = shalt.err (!%p2433_p11)
}
 0x263   : > { %s2437_s29 = scalar_lea.hbm %s3516_s30, 16  ;;  %s2441_s19 = scalar_lea.hbm %s3579_s10, 64 }
 0x264   : > { %p2438_p12 = scmp.ne.s32.totalorder %s3516_s30, %s2437_s29  ;;  %p2442_p1 = scmp.lt.u32.totalorder %s3516_s30, %s3579_s10 }
 0x265   : > { %p2443_p2 = scmp.lt.u32.totalorder %s2441_s19, %s2437_s29  ;;  %p2445_p5 = scmp.lt.u32.totalorder %s2437_s29, %s3516_s30 }
 0x266   : > { %p2439_p13 = pnand %p2438_p12, %p2628_p3 }
 0x267   : > { %p2444_p4 = por %p2443_p2, %p2442_p1 }
 0x268   : > { %p2440_p0 = pneg %p2439_p13 }
 0x269   : > { %p2446_p6 = por %p2445_p5, %p2444_p4 }
 0x26b   : > { %p2447_p7 = pnand %p2446_p6, %p2440_p0 }
 0x26d   : > { %2450 = shalt.err (!%p2447_p7)
}
 0x26e   : > { %2341 = dma.vmem_to_hbm [thread:$0]  (%p2628_p3), %s3518_s11, 16, %s3516_s30, %s1952_s17  }
 0x26f PF: > { %p2347_p9 = scmp.ge.s32.totalorder %s2517_s20, 2  ;;  %s2010_s28 = sand.u32 1, %s2489_s13  }
 0x270   : > { %s2011_s16 = scalar_lea.sflag [#allocation4], %s2010_s28 }
 0x271   : > { %p2344_p10 = pnand %p2347_p9, %p2637_p8 }
 0x273   : > { %2484 = dma.done.wait (!%p2344_p10), %s2011_s16, 16  }
 0x274   : > { %2486 = vsyncadd (!%p2344_p10), %s2011_s16, 4294967280  ;;  %s24_s20 = sadd.s32 1, %s2517_s20   ;;  %s3635_s26 = sld [smem:[#allocation10_spill]] }
 0x275   : > { %p21_p11 = scmp.ge.s32.totalorder %s24_s20, 6   ;;  %s3636_s16 = sld [smem:[#allocation6_spill]] }
 0x276   : > { %s3637_s17 = sld [smem:[#allocation7_spill]]  ;;  %s3638_s18 = sld [smem:[#allocation8_spill]] }
 0x277   : > { %s3639_s19 = sld [smem:[#allocation9_spill]]  ;;  %s3640_s13 = smov %s2493_s14 }
 0x278   : > { %s3641_s14 = smov %s2497_s15  ;;  %23 = sbr.rel (!%p21_p11) target bundleno = 5 (0x5), region = 114 }
 0x27a   : > { %s3642_s15 = smov %s3635_s26 }
 0x27f   :  { %2015 = vsyncpa [#allocation4], 1 }
 0x280   :  { %2017 = vsyncpa [#allocation4 + $0x1], 1 }

</bundles_post_ra>
